<compile_context>
chip_gen: v7x
topology: tpu7x:2x2x1
jax: 0.10.0
libtpu: 0.0.40
codegen_flags: <defaults>
</compile_context>

<pallas_src>
import functools
import math

import jax
import jax.numpy as jnp
from jax import lax
from jax.experimental import pallas as pl
from jax.experimental.pallas import tpu as pltpu


def _round_up(n, m):
    return ((n + m - 1) // m) * m


def discriminator_kernel(x_ref, w1_ref, b1_ref, w2_ref, b2_ref, w3_ref, b3_ref,
                         o_ref):
    """One batch tile. Activations are laid out (features, batch_tile)."""
    # x tile in native (bb, D) f32; cast to bf16 in-kernel (under MXU slack).
    xb = x_ref[...].astype(jnp.bfloat16)                  # (bb, D)

    # Layer 1: contract D of (256, D) with D of (bb, D) -> (256, bb).
    # bf16 MXU with f32 accumulation; transpose is absorbed by the MXU feed.
    h1 = lax.dot_general(w1_ref[...], xb,
                         dimension_numbers=(((1,), (1,)), ((), ())),
                         preferred_element_type=jnp.float32)
    h1 = h1 + b1_ref[...]                                 # (256, 1) broadcast
    h1 = jnp.maximum(h1, 0.2 * h1)                        # LeakyReLU(0.2)

    # Layer 2: (128, 256) @ (256, bb) -> (128, bb).
    h2 = jnp.dot(w2_ref[...], h1.astype(jnp.bfloat16),
                 preferred_element_type=jnp.float32)
    h2 = h2 + b2_ref[...]
    h2 = jnp.maximum(h2, 0.2 * h2)

    # Layer 3 (128 -> 1): VPU broadcast-multiply + sublane (XLU) reduction
    # instead of an M=1 matmul; result is a lane-dense (1, bb) row.
    h3 = jnp.sum(h2 * w3_ref[...], axis=0, keepdims=True) + b3_ref[...]

    # Sign-stable sigmoid on the EUP: sigmoid(x) = 0.5*tanh(x/2) + 0.5.
    o_ref[...] = (0.5 * jnp.tanh(0.5 * h3) + 0.5).astype(o_ref.dtype)


@functools.partial(jax.jit, static_argnames=("block_b",))
def discriminator_forward(x, params, block_b=1024):
    """x: (B, input_dim) float32 -> (B, 1) float32 probabilities."""
    w1, b1, w2, b2, w3, b3 = params
    B, D = x.shape

    # Effective batch tile: multiple of 128 (lane-dense output stores), capped
    # so the whole batch collapses to ONE grid step whenever it fits (best on
    # single-TC v5e/v6e); huge batches fall back to ceil(B/block_b) tiles that
    # can be megacore-sharded on v7x.
    bb = min(block_b, _round_up(B, 128))
    num_tiles = pl.cdiv(B, bb)

    flops = 2 * B * (256 * D + 128 * 256 + 128)
    bytes_accessed = (x.size * x.dtype.itemsize
                      + sum(int(p.size) * p.dtype.itemsize for p in params)
                      + B * 4)

    out_row = pl.pallas_call(
        discriminator_kernel,
        out_shape=jax.ShapeDtypeStruct((1, B), jnp.float32),
        grid_spec=pltpu.PrefetchScalarGridSpec(
            num_scalar_prefetch=0,
            grid=(num_tiles,),
            in_specs=[
                # Native (batch, D) input tile; ragged tail handled by the
                # non-divisible last block (garbage columns never mix with
                # valid ones since every op is per-batch-column).
                pl.BlockSpec((bb, D), lambda i: (i, 0)),
                # Weights / biases: constant block index -> stay resident in
                # VMEM across all grid steps (no per-step re-DMA).
                pl.BlockSpec(w1.shape, lambda i: (0, 0)),
                pl.BlockSpec(b1.shape, lambda i: (0, 0)),
                pl.BlockSpec(w2.shape, lambda i: (0, 0)),
                pl.BlockSpec(b2.shape, lambda i: (0, 0)),
                pl.BlockSpec(w3.shape, lambda i: (0, 0)),
                pl.BlockSpec(b3.shape, lambda i: (0, 0)),
            ],
            out_specs=pl.BlockSpec((1, bb), lambda i: (0, i)),
        ),
        compiler_params=pltpu.CompilerParams(
            # Batch axis is independent work (megacore-shardable on v7x).
            dimension_semantics=("parallel",),
            vmem_limit_bytes=32 * 1024 * 1024,   # safe on v5e/v6e and v7x (64 MiB)
        ),
        cost_estimate=pl.CostEstimate(
            flops=flops, transcendentals=B, bytes_accessed=bytes_accessed),
    )(x, w1, b1, w2, b2, w3, b3)

    # (1, B) row-major has the same layout as (B, 1): free reshape.
    return out_row.reshape(B, 1)


def init_params(key, input_dim):
    """PyTorch nn.Linear-style init: U[-1/sqrt(fan_in), 1/sqrt(fan_in)].

    w1/w2 are kept in PyTorch (out_features, in_features) layout as bf16 (the
    matmuls accumulate in f32); w3 is a (128, 1) f32 column for the VPU/XLU
    layer-3 path; biases are f32 (out_features, 1) columns.
    """
    dims = [(input_dim, 256), (256, 128), (128, 1)]
    params = []
    for li, (fan_in, fan_out) in enumerate(dims):
        key, kw, kb = jax.random.split(key, 3)
        bound = 1.0 / math.sqrt(fan_in)
        w = jax.random.uniform(kw, (fan_out, fan_in), jnp.float32, -bound, bound)
        b = jax.random.uniform(kb, (fan_out, 1), jnp.float32, -bound, bound)
        if li < 2:
            w = w.astype(jnp.bfloat16)
        else:
            w = w.T                      # (128, 1) column, f32
        params.extend([w, b])
    return tuple(params)


def reference_forward(x, params):
    """Pure-JAX reference mirroring the kernel's bf16-matmul / f32-accum math."""
    w1, b1, w2, b2, w3, b3 = params
    h = jnp.dot(x.astype(jnp.bfloat16), w1.T,
                preferred_element_type=jnp.float32) + b1[:, 0]
    h = jnp.where(h > 0, h, 0.2 * h)
    h = jnp.dot(h.astype(jnp.bfloat16), w2.T,
                preferred_element_type=jnp.float32) + b2[:, 0]
    h = jnp.where(h > 0, h, 0.2 * h)
    h = jnp.dot(h, w3) + b3[0, 0]
    return jax.nn.sigmoid(h)


if __name__ == "__main__":
    key = jax.random.PRNGKey(0)
    kx, kp = jax.random.split(key)

    batch, input_dim = 512, 64
    x = jax.random.normal(kx, (batch, input_dim), jnp.float32)
    params = init_params(kp, input_dim)

    out = jax.block_until_ready(discriminator_forward(x, params))
    ref = reference_forward(x, params)
    assert out.shape == (batch, 1), out.shape
    err = float(jnp.max(jnp.abs(out - ref)))
    assert err < 2e-3, f"max abs err = {err}"

    # Ragged batch: exercises the non-divisible last block (no wrapper pad).
    x_small = x[:37]
    out_small = jax.block_until_ready(discriminator_forward(x_small, params))
    assert out_small.shape == (37, 1), out_small.shape
    err_small = float(jnp.max(jnp.abs(out_small - ref[:37])))
    assert err_small < 2e-3, f"ragged max abs err = {err_small}"

    print("KERNEL_OK")
</pallas_src>

<mosaic_0001>
module attributes {stable_mosaic.version = 11 : i64} {
  func.func @discriminator_kernel(%arg0: i32, %arg1: memref<512x64xf32, #tpu.memory_space<vmem>>, %arg2: memref<256x64xbf16, #tpu.memory_space<vmem>>, %arg3: memref<256x1xf32, #tpu.memory_space<vmem>>, %arg4: memref<128x256xbf16, #tpu.memory_space<vmem>>, %arg5: memref<128x1xf32, #tpu.memory_space<vmem>>, %arg6: memref<128x1xf32, #tpu.memory_space<vmem>>, %arg7: memref<1x1xf32, #tpu.memory_space<vmem>>, %arg8: memref<1x512xf32, #tpu.memory_space<vmem>>) attributes {dimension_semantics = [#tpu.dimension_semantics<parallel>], iteration_bounds = array<i64: 1>, scalar_prefetch = 0 : i64, scratch_operands = 0 : i64, tpu.core_type = #tpu.core_type<tc>, window_params = [{transform_indices = @transform_0, window_bounds = array<i64: 512, 64>}, {pipeline_mode = #tpu.pipeline_mode<synchronous>, transform_indices = @transform_1, window_bounds = array<i64: 256, 64>}, {pipeline_mode = #tpu.pipeline_mode<synchronous>, transform_indices = @transform_2, window_bounds = array<i64: 256, 1>}, {pipeline_mode = #tpu.pipeline_mode<synchronous>, transform_indices = @transform_3, window_bounds = array<i64: 128, 256>}, {pipeline_mode = #tpu.pipeline_mode<synchronous>, transform_indices = @transform_4, window_bounds = array<i64: 128, 1>}, {pipeline_mode = #tpu.pipeline_mode<synchronous>, transform_indices = @transform_5, window_bounds = array<i64: 128, 1>}, {pipeline_mode = #tpu.pipeline_mode<synchronous>, transform_indices = @transform_6, window_bounds = array<i64: 1, 1>}, {transform_indices = @transform_7, window_bounds = array<i64: 1, 512>}]} {
    %c0 = arith.constant 0 : index
    %c0_0 = arith.constant 0 : index
    %0 = vector.load %arg1[%c0, %c0_0] : memref<512x64xf32, #tpu.memory_space<vmem>>, vector<512x64xf32>
    %1 = arith.truncf %0 : vector<512x64xf32> to vector<512x64xbf16>
    %c0_1 = arith.constant 0 : index
    %c0_2 = arith.constant 0 : index
    %2 = vector.load %arg2[%c0_1, %c0_2] : memref<256x64xbf16, #tpu.memory_space<vmem>>, vector<256x64xbf16>
    %cst = arith.constant dense<0.000000e+00> : vector<256x512xf32>
    %3 = tpu.matmul %2, %1, %cst {dimension_numbers = #tpu.dot_dimension_numbers<[1], [1], [0], [0], [0, 0, 1, 0], [], []>} : vector<256x64xbf16>, vector<512x64xbf16>, vector<256x512xf32> -> vector<256x512xf32>
    %c0_3 = arith.constant 0 : index
    %c0_4 = arith.constant 0 : index
    %4 = vector.load %arg3[%c0_3, %c0_4] : memref<256x1xf32, #tpu.memory_space<vmem>>, vector<256x1xf32>
    %5 = vector.broadcast %4 : vector<256x1xf32> to vector<256x512xf32>
    %6 = arith.addf %3, %5 : vector<256x512xf32>
    %cst_5 = arith.constant 2.000000e-01 : f32
    %7 = vector.broadcast %cst_5 : f32 to vector<256x512xf32>
    %8 = arith.mulf %7, %6 : vector<256x512xf32>
    %9 = arith.maximumf %6, %8 : vector<256x512xf32>
    %c0_6 = arith.constant 0 : index
    %c0_7 = arith.constant 0 : index
    %10 = vector.load %arg4[%c0_6, %c0_7] : memref<128x256xbf16, #tpu.memory_space<vmem>>, vector<128x256xbf16>
    %11 = arith.truncf %9 : vector<256x512xf32> to vector<256x512xbf16>
    %cst_8 = arith.constant dense<0.000000e+00> : vector<128x512xf32>
    %12 = tpu.matmul %10, %11, %cst_8 {dimension_numbers = #tpu.dot_dimension_numbers<[1], [0], [0], [1], [0, 0, 1, 1], [], []>} : vector<128x256xbf16>, vector<256x512xbf16>, vector<128x512xf32> -> vector<128x512xf32>
    %c0_9 = arith.constant 0 : index
    %c0_10 = arith.constant 0 : index
    %13 = vector.load %arg5[%c0_9, %c0_10] : memref<128x1xf32, #tpu.memory_space<vmem>>, vector<128x1xf32>
    %14 = vector.broadcast %13 : vector<128x1xf32> to vector<128x512xf32>
    %15 = arith.addf %12, %14 : vector<128x512xf32>
    %cst_11 = arith.constant 2.000000e-01 : f32
    %16 = vector.broadcast %cst_11 : f32 to vector<128x512xf32>
    %17 = arith.mulf %16, %15 : vector<128x512xf32>
    %18 = arith.maximumf %15, %17 : vector<128x512xf32>
    %c0_12 = arith.constant 0 : index
    %c0_13 = arith.constant 0 : index
    %19 = vector.load %arg6[%c0_12, %c0_13] : memref<128x1xf32, #tpu.memory_space<vmem>>, vector<128x1xf32>
    %20 = vector.broadcast %19 : vector<128x1xf32> to vector<128x512xf32>
    %21 = arith.mulf %18, %20 : vector<128x512xf32>
    %cst_14 = arith.constant dense<0.000000e+00> : vector<512xf32>
    %22 = vector.multi_reduction <add>, %21, %cst_14 [0] : vector<128x512xf32> to vector<512xf32>
    %23 = vector.shape_cast %22 : vector<512xf32> to vector<1x512xf32>
    %c0_15 = arith.constant 0 : index
    %c0_16 = arith.constant 0 : index
    %24 = vector.load %arg7[%c0_15, %c0_16] : memref<1x1xf32, #tpu.memory_space<vmem>>, vector<1x1xf32>
    %25 = vector.broadcast %24 : vector<1x1xf32> to vector<1x512xf32>
    %26 = arith.addf %23, %25 : vector<1x512xf32>
    %cst_17 = arith.constant 5.000000e-01 : f32
    %27 = vector.broadcast %cst_17 : f32 to vector<1x512xf32>
    %28 = arith.mulf %27, %26 : vector<1x512xf32>
    %29 = math.tanh %28 : vector<1x512xf32>
    %cst_18 = arith.constant 5.000000e-01 : f32
    %30 = vector.broadcast %cst_18 : f32 to vector<1x512xf32>
    %31 = arith.mulf %30, %29 : vector<1x512xf32>
    %cst_19 = arith.constant 5.000000e-01 : f32
    %32 = vector.broadcast %cst_19 : f32 to vector<1x512xf32>
    %33 = arith.addf %31, %32 : vector<1x512xf32>
    %c0_20 = arith.constant 0 : index
    %c0_21 = arith.constant 0 : index
    %34 = vector.load %arg8[%c0_20, %c0_21] : memref<1x512xf32, #tpu.memory_space<vmem>>, vector<1x512xf32>
    tpu.vector_store %arg8[%c0_20, %c0_21], %33 {strides = array<i32>} : memref<1x512xf32, #tpu.memory_space<vmem>>, vector<1x512xf32>,
    return
  }
  func.func @transform_0(%arg0: i32) -> (i32, i32) {
    %c0_i32 = arith.constant 0 : i32
    %c0_i32_0 = arith.constant 0 : i32
    return %arg0, %c0_i32 : i32, i32
  }
  func.func @transform_1(%arg0: i32) -> (i32, i32) {
    %c0_i32 = arith.constant 0 : i32
    %c0_i32_0 = arith.constant 0 : i32
    %c0_i32_1 = arith.constant 0 : i32
    return %c0_i32, %c0_i32_0 : i32, i32
  }
  func.func @transform_2(%arg0: i32) -> (i32, i32) {
    %c0_i32 = arith.constant 0 : i32
    %c0_i32_0 = arith.constant 0 : i32
    %c0_i32_1 = arith.constant 0 : i32
    return %c0_i32, %c0_i32_0 : i32, i32
  }
  func.func @transform_3(%arg0: i32) -> (i32, i32) {
    %c0_i32 = arith.constant 0 : i32
    %c0_i32_0 = arith.constant 0 : i32
    %c0_i32_1 = arith.constant 0 : i32
    return %c0_i32, %c0_i32_0 : i32, i32
  }
  func.func @transform_4(%arg0: i32) -> (i32, i32) {
    %c0_i32 = arith.constant 0 : i32
    %c0_i32_0 = arith.constant 0 : i32
    %c0_i32_1 = arith.constant 0 : i32
    return %c0_i32, %c0_i32_0 : i32, i32
  }
  func.func @transform_5(%arg0: i32) -> (i32, i32) {
    %c0_i32 = arith.constant 0 : i32
    %c0_i32_0 = arith.constant 0 : i32
    %c0_i32_1 = arith.constant 0 : i32
    return %c0_i32, %c0_i32_0 : i32, i32
  }
  func.func @transform_6(%arg0: i32) -> (i32, i32) {
    %c0_i32 = arith.constant 0 : i32
    %c0_i32_0 = arith.constant 0 : i32
    %c0_i32_1 = arith.constant 0 : i32
    return %c0_i32, %c0_i32_0 : i32, i32
  }
  func.func @transform_7(%arg0: i32) -> (i32, i32) {
    %c0_i32 = arith.constant 0 : i32
    %c0_i32_0 = arith.constant 0 : i32
    return %c0_i32, %arg0 : i32, i32
  }
}

</mosaic_0001>

<bundles_post_ra>
// kernel: discriminator_forward.1
= control target key start
LH: loop header
LB: loop body
LE: loop exit
PB: predicated region body
PF: predicated region fallthrough
CT: control target
= control target key end

     0   :  { %s3188_s0 = inlined_call_operand.vmem [shape: f32[512,64], index: 0, kind: input, shape index: {}]   ;;  %s3189_s1 = inlined_call_operand.vmem [shape: bf16[256,64], index: 1, kind: input, shape index: {}]   ;;  %s3190_s2 = inlined_call_operand.vmem [shape: f32[256,1], index: 2, kind: input, shape index: {}]   ;;  %s3191_s3 = inlined_call_operand.vmem [shape: bf16[128,256], index: 3, kind: input, shape index: {}]   ;;  %s3192_s4 = inlined_call_operand.vmem [shape: f32[128,1], index: 4, kind: input, shape index: {}]   ;;  %s3193_s5 = inlined_call_operand.vmem [shape: f32[128,1], index: 5, kind: input, shape index: {}]   ;;  %s3194_s6 = inlined_call_operand.<no memory space> [shape: f32[1,1], index: 6, kind: input, shape index: {}]   ;;  %s3195_s7 = inlined_call_operand.hbm [shape: f32[1,512], index: 7, kind: output, shape index: {}]  }
   0x1   :  { %v12_v0 = vstv %s3194_s6 }
   0x2   :  { %13 = vst [vmem:[#allocation2] sm:$0x1] %v12_v0 }
   0x3   :  { %v46_v1 = vld [vmem:[%s3188_s0 + $0x80] sm:$0xff]  ;;  %v47_v2 = vld [vmem:[%s3188_s0 + $0x88] sm:$0xff]  ;;  %vm430_vm0 = vcmask 523264   ;;  %v2402_v8 = vmov 0   ;;  %v48_v13 = vld [vmem:[%s3188_s0 + $0x90] sm:$0xff] }
   0x4   :  { %v78_v3 = vld [vmem:[%s3188_s0 + $0x180] sm:$0xff]  ;;  %v102_v4 = vpack.c.bf16 %v47_v2, %v46_v1  ;;  %v79_v5 = vld [vmem:[%s3188_s0 + $0x188] sm:$0xff]  ;;  %2328 = vset.pattern.permute.xlu0 %v2402_v8  ;;  %2329 = vset.pattern.permute.xlu1 %v2402_v8  ;;  %v49_v15 = vld [vmem:[%s3188_s0 + $0x98] sm:$0xff] }
   0x5   :  { %v30_v6 = vld [vmem:[%s3188_s0] sm:$0xff]  ;;  %v31_v7 = vld [vmem:[%s3188_s0 + $0x8] sm:$0xff]  ;;  %v118_v9 = vpack.c.bf16 %v79_v5, %v78_v3  ;;  %v80_v16 = vld [vmem:[%s3188_s0 + $0x190] sm:$0xff]  ;;  %v103_v19 = vpack.c.bf16 %v49_v15, %v48_v13 }
   0x6   :  { %v94_v10 = vpack.c.bf16 %v31_v7, %v30_v6  ;;  %v62_v11 = vld [vmem:[%s3188_s0 + $0x100] sm:$0xff]  ;;  %v63_v12 = vld [vmem:[%s3188_s0 + $0x108] sm:$0xff]  ;;  %2309 = vmatprep.subr.msk.bf16.mxu0 %vm430_vm0, %v102_v4  ;;  %v81_v17 = vld [vmem:[%s3188_s0 + $0x198] sm:$0xff] }
   0x7   :  { %v110_v14 = vpack.c.bf16 %v63_v12, %v62_v11  ;;  %2317 = vmatprep.subr.msk.bf16.mxu1 %vm430_vm0, %v118_v9  ;;  %v119_v20 = vpack.c.bf16 %v81_v17, %v80_v16  ;;  %v32_v21 = vld [vmem:[%s3188_s0 + $0x10] sm:$0xff]  ;;  %v33_v22 = vld [vmem:[%s3188_s0 + $0x18] sm:$0xff]  ;;  %v50_v28 = vld [vmem:[%s3188_s0 + $0xa0] sm:$0xff] }
   0x8   :  { %v480_v18 = vsel %vm430_vm0, %v94_v10, 0  ;;  %v64_v23 = vld [vmem:[%s3188_s0 + $0x110] sm:$0xff]  ;;  %v65_v25 = vld [vmem:[%s3188_s0 + $0x118] sm:$0xff]  ;;  %v95_v26 = vpack.c.bf16 %v33_v22, %v32_v21  ;;  %v51_v29 = vld [vmem:[%s3188_s0 + $0xa8] sm:$0xff] }
   0x9   :  { %2214 = vmatpush3.bf16.xpose.msra.mxu0 %v480_v18  ;;  %v528_v24 = vsel %vm430_vm0, %v110_v14, 0  ;;  %v111_v27 = vpack.c.bf16 %v65_v25, %v64_v23  ;;  %v82_v30 = vld [vmem:[%s3188_s0 + $0x1a0] sm:$0xff]  ;;  %v83_v31 = vld [vmem:[%s3188_s0 + $0x1a8] sm:$0xff]  ;;  %v104_v34 = vpack.c.bf16 %v51_v29, %v50_v28  ;;  %v160_v40 = vld [vmem:[%s3190_s2 + $0x10] sm:$0xff] }
   0xa   :  { %2262 = vmatpush3.bf16.xpose.msra.mxu1 %v528_v24  ;;  %2310 = vmatprep.subr.msk.bf16.mxu0 %vm430_vm0, %v103_v19  ;;  %v158_v32 = vld [vmem:[%s3190_s2] sm:$0xff]  ;;  %v483_v33 = vsel %vm430_vm0, %v95_v26, 0  ;;  %v159_v35 = vld [vmem:[%s3190_s2 + $0x8] sm:$0xff]  ;;  %v120_v37 = vpack.c.bf16 %v83_v31, %v82_v30  ;;  %v52_v46 = vld [vmem:[%s3188_s0 + $0xb0] sm:$0xff] }
   0xb   :  { %2318 = vmatprep.subr.msk.bf16.mxu1 %vm430_vm0, %v119_v20  ;;  %192 = vperm.xlu0 %2328, %v158_v32   ;;  %v531_v36 = vsel %vm430_vm0, %v111_v27, 0  ;;  %v34_v38 = vld [vmem:[%s3188_s0 + $0x20] sm:$0xff]  ;;  %v35_v39 = vld [vmem:[%s3188_s0 + $0x28] sm:$0xff]  ;;  %v53_v47 = vld [vmem:[%s3188_s0 + $0xb8] sm:$0xff] }
   0xc   :  { %v66_v41 = vld [vmem:[%s3188_s0 + $0x120] sm:$0xff]  ;;  %v67_v42 = vld [vmem:[%s3188_s0 + $0x128] sm:$0xff]  ;;  %202 = vperm.xlu1 %2329, %v160_v40   ;;  %v96_v43 = vpack.c.bf16 %v35_v39, %v34_v38  ;;  %v161_v48 = vld [vmem:[%s3190_s2 + $0x18] sm:$0xff]  ;;  %v105_v53 = vpack.c.bf16 %v53_v47, %v52_v46 }
   0xd   :  { %v162_v44 = vld [vmem:[%s3190_s2 + $0x20] sm:$0xff]  ;;  %v112_v45 = vpack.c.bf16 %v67_v42, %v66_v41  ;;  %v84_v49 = vld [vmem:[%s3188_s0 + $0x1b0] sm:$0xff]  ;;  %v85_v50 = vld [vmem:[%s3188_s0 + $0x1b8] sm:$0xff] }
   0xe   :  { %v163_v51 = vld [vmem:[%s3190_s2 + $0x28] sm:$0xff]  ;;  %v486_v52 = vsel %vm430_vm0, %v96_v43, 0  ;;  %v164_v54 = vld [vmem:[%s3190_s2 + $0x30] sm:$0xff]  ;;  %v121_v56 = vpack.c.bf16 %v85_v50, %v84_v49  ;;  %v37_v58 = vld [vmem:[%s3188_s0 + $0x38] sm:$0xff] }
   0xf   :  { %197 = vperm.xlu0 %2328, %v159_v35   ;;  %v534_v55 = vsel %vm430_vm0, %v112_v45, 0  ;;  %v36_v57 = vld [vmem:[%s3188_s0 + $0x30] sm:$0xff]  ;;  %v69_v60 = vld [vmem:[%s3188_s0 + $0x138] sm:$0xff]  ;;  %v166_v63 = vld [vmem:[%s3190_s2 + $0x40] sm:$0xff] }
  0x10   :  { %207 = vperm.xlu1 %2329, %v161_v48   ;;  %v68_v59 = vld [vmem:[%s3188_s0 + $0x130] sm:$0xff]  ;;  %v165_v61 = vld [vmem:[%s3190_s2 + $0x38] sm:$0xff]  ;;  %v97_v62 = vpack.c.bf16 %v37_v58, %v36_v57  ;;  %v54_v1 = vld [vmem:[%s3188_s0 + $0xc0] sm:$0xff] }
  0x11   :  { %2216 = vmatpush3.bf16.xpose.msra.mxu0 %v483_v33  ;;  %v113_v0 = vpack.c.bf16 %v69_v60, %v68_v59  ;;  %v55_v2 = vld [vmem:[%s3188_s0 + $0xc8] sm:$0xff]  ;;  %v86_v3 = vld [vmem:[%s3188_s0 + $0x1c0] sm:$0xff]  ;;  %v168_v8 = vld [vmem:[%s3190_s2 + $0x50] sm:$0xff] }
  0x12   :  { %2264 = vmatpush3.bf16.xpose.msra.mxu1 %v531_v36  ;;  %2311 = vmatprep.subr.msk.bf16.mxu0 %vm430_vm0, %v104_v34  ;;  %v87_v4 = vld [vmem:[%s3188_s0 + $0x1c8] sm:$0xff]  ;;  %v489_v6 = vsel %vm430_vm0, %v97_v62, 0  ;;  %v106_v7 = vpack.c.bf16 %v55_v2, %v54_v1  ;;  %v38_v11 = vld [vmem:[%s3188_s0 + $0x40] sm:$0xff]  ;;  %v169_v15 = vld [vmem:[%s3190_s2 + $0x58] sm:$0xff] }
  0x13   :  { %2319 = vmatprep.subr.msk.bf16.mxu1 %vm430_vm0, %v120_v37  ;;  %212 = vperm.xlu0 %2328, %v162_v44   ;;  %v167_v5 = vld [vmem:[%s3190_s2 + $0x48] sm:$0xff]  ;;  %v537_v9 = vsel %vm430_vm0, %v113_v0, 0  ;;  %v122_v10 = vpack.c.bf16 %v87_v4, %v86_v3  ;;  %v70_v13 = vld [vmem:[%s3188_s0 + $0x140] sm:$0xff]  ;;  %v56_v20 = vld [vmem:[%s3188_s0 + $0xd0] sm:$0xff] }
  0x14   :  { %217 = vperm.xlu1 %2329, %v163_v51   ;;  %v39_v12 = vld [vmem:[%s3188_s0 + $0x48] sm:$0xff]  ;;  %v2623_v16 = vld [vmem:[%s3189_s1] sm:$0xff]   ;;  %v57_v21 = vld [vmem:[%s3188_s0 + $0xd8] sm:$0xff] }
  0x15   :  { %v71_v14 = vld [vmem:[%s3188_s0 + $0x148] sm:$0xff]  ;;  %v98_v17 = vpack.c.bf16 %v39_v12, %v38_v11  ;;  %v170_v18 = vld [vmem:[%s3190_s2 + $0x60] sm:$0xff]  ;;  %2229 = vmatprep.mubr.msk.bf16.mxu0 %vm430_vm0, %v2623_v16  ;;  %v88_v22 = vld [vmem:[%s3188_s0 + $0x1d0] sm:$0xff]  ;;  %2277 = vmatprep.mubr.msk.bf16.mxu1 %vm430_vm0, %v2623_v16  ;;  %v107_v26 = vpack.c.bf16 %v57_v21, %v56_v20 }
  0x16   :  { %v114_v19 = vpack.c.bf16 %v71_v14, %v70_v13  ;;  %v89_v23 = vld [vmem:[%s3188_s0 + $0x1d8] sm:$0xff]  ;;  %v171_v24 = vld [vmem:[%s3190_s2 + $0x68] sm:$0xff]  ;;  %v40_v27 = vld [vmem:[%s3188_s0 + $0x50] sm:$0xff] }
  0x17   :  { %222 = vperm.xlu0 %2328, %v164_v54   ;;  %v492_v25 = vsel %vm430_vm0, %v98_v17, 0  ;;  %v172_v28 = vld [vmem:[%s3190_s2 + $0x70] sm:$0xff]  ;;  %v123_v30 = vpack.c.bf16 %v89_v23, %v88_v22  ;;  %v41_v31 = vld [vmem:[%s3188_s0 + $0x58] sm:$0xff]  ;;  %v174_v36 = vld [vmem:[%s3190_s2 + $0x80] sm:$0xff] }
  0x18   :  { %227 = vperm.xlu1 %2329, %v165_v61   ;;  %v540_v29 = vsel %vm430_vm0, %v114_v19, 0  ;;  %v72_v32 = vld [vmem:[%s3188_s0 + $0x150] sm:$0xff]  ;;  %v73_v33 = vld [vmem:[%s3188_s0 + $0x158] sm:$0xff]  ;;  %v99_v35 = vpack.c.bf16 %v41_v31, %v40_v27  ;;  %v58_v38 = vld [vmem:[%s3188_s0 + $0xe0] sm:$0xff] }
  0x19   :  { %2218 = vmatpush3.bf16.xpose.msra.mxu0 %v486_v52  ;;  %v173_v34 = vld [vmem:[%s3190_s2 + $0x78] sm:$0xff]  ;;  %v115_v37 = vpack.c.bf16 %v73_v33, %v72_v32  ;;  %v59_v39 = vld [vmem:[%s3188_s0 + $0xe8] sm:$0xff]  ;;  %v90_v40 = vld [vmem:[%s3188_s0 + $0x1e0] sm:$0xff] }
  0x1a   :  { %2266 = vmatpush3.bf16.xpose.msra.mxu1 %v534_v55  ;;  %2312 = vmatprep.subr.msk.bf16.mxu0 %vm430_vm0, %v105_v53  ;;  %v91_v41 = vld [vmem:[%s3188_s0 + $0x1e8] sm:$0xff]  ;;  %v495_v43 = vsel %vm430_vm0, %v99_v35, 0  ;;  %v108_v44 = vpack.c.bf16 %v59_v39, %v58_v38  ;;  %v176_v45 = vld [vmem:[%s3190_s2 + $0x90] sm:$0xff]  ;;  %v42_v48 = vld [vmem:[%s3188_s0 + $0x60] sm:$0xff] }
  0x1b   :  { %2320 = vmatprep.subr.msk.bf16.mxu1 %vm430_vm0, %v121_v56  ;;  %232 = vperm.xlu0 %2328, %v166_v63   ;;  %v175_v42 = vld [vmem:[%s3190_s2 + $0x88] sm:$0xff]  ;;  %v543_v46 = vsel %vm430_vm0, %v115_v37, 0  ;;  %v124_v47 = vpack.c.bf16 %v91_v41, %v90_v40  ;;  %v74_v50 = vld [vmem:[%s3188_s0 + $0x160] sm:$0xff]  ;;  %v177_v52 = vld [vmem:[%s3190_s2 + $0x98] sm:$0xff] }
  0x1c   :  { %237 = vperm.xlu1 %2329, %v167_v5   ;;  %v43_v49 = vld [vmem:[%s3188_s0 + $0x68] sm:$0xff]  ;;  %v60_v54 = vld [vmem:[%s3188_s0 + $0xf0] sm:$0xff]  ;;  %v178_v55 = vld [vmem:[%s3190_s2 + $0xa0] sm:$0xff] }
  0x1d   :  { %v75_v51 = vld [vmem:[%s3188_s0 + $0x168] sm:$0xff]  ;;  %v100_v53 = vpack.c.bf16 %v43_v49, %v42_v48  ;;  %v61_v57 = vld [vmem:[%s3188_s0 + $0xf8] sm:$0xff]  ;;  %v92_v58 = vld [vmem:[%s3188_s0 + $0x1f0] sm:$0xff] }
  0x1e   :  { %v116_v56 = vpack.c.bf16 %v75_v51, %v74_v50  ;;  %v93_v59 = vld [vmem:[%s3188_s0 + $0x1f8] sm:$0xff]  ;;  %v179_v60 = vld [vmem:[%s3190_s2 + $0xa8] sm:$0xff]  ;;  %v109_v62 = vpack.c.bf16 %v61_v57, %v60_v54  ;;  %v180_v63 = vld [vmem:[%s3190_s2 + $0xb0] sm:$0xff] }
  0x1f   :  { %242 = vperm.xlu0 %2328, %v168_v8   ;;  %v498_v61 = vsel %vm430_vm0, %v100_v53, 0  ;;  %v125_v1 = vpack.c.bf16 %v93_v59, %v92_v58  ;;  %v44_v2 = vld [vmem:[%s3188_s0 + $0x70] sm:$0xff]  ;;  %v45_v3 = vld [vmem:[%s3188_s0 + $0x78] sm:$0xff]  ;;  %v182_v8 = vld [vmem:[%s3190_s2 + $0xc0] sm:$0xff] }
  0x20   :  { %247 = vperm.xlu1 %2329, %v169_v15   ;;  %v546_v0 = vsel %vm430_vm0, %v116_v56, 0  ;;  %v76_v4 = vld [vmem:[%s3188_s0 + $0x170] sm:$0xff]  ;;  %v77_v5 = vld [vmem:[%s3188_s0 + $0x178] sm:$0xff]  ;;  %v186_v15 = vld [vmem:[%s3190_s2 + $0xe0] sm:$0xff] }
  0x21   :  { %2220 = vmatpush3.bf16.xpose.msra.mxu0 %v489_v6  ;;  %v181_v6 = vld [vmem:[%s3190_s2 + $0xb8] sm:$0xff]  ;;  %v184_v12 = vld [vmem:[%s3190_s2 + $0xd0] sm:$0xff] }
  0x22   :  { %2268 = vmatpush3.bf16.xpose.msra.mxu1 %v537_v9  ;;  %2313 = vmatprep.subr.msk.bf16.mxu0 %vm430_vm0, %v106_v7  ;;  %v101_v7 = vpack.c.bf16 %v45_v3, %v44_v2  ;;  %v117_v9 = vpack.c.bf16 %v77_v5, %v76_v4  ;;  %v185_v14 = vld [vmem:[%s3190_s2 + $0xd8] sm:$0xff] }
  0x23   :  { %2321 = vmatprep.subr.msk.bf16.mxu1 %vm430_vm0, %v122_v10  ;;  %252 = vperm.xlu0 %2328, %v170_v18   ;;  %v183_v10 = vld [vmem:[%s3190_s2 + $0xc8] sm:$0xff] }
  0x24   :  { %257 = vperm.xlu1 %2329, %v171_v24   ;;  %v501_v11 = vsel %vm430_vm0, %v101_v7, 0  ;;  %v549_v13 = vsel %vm430_vm0, %v117_v9, 0 }
  0x27   :  { %262 = vperm.xlu0 %2328, %v172_v28  }
  0x28   :  { %267 = vperm.xlu1 %2329, %v173_v34  }
  0x29   :  { %2222 = vmatpush3.bf16.xpose.msra.mxu0 %v492_v25 }
  0x2a   :  { %2270 = vmatpush3.bf16.xpose.msra.mxu1 %v540_v29  ;;  %2314 = vmatprep.subr.msk.bf16.mxu0 %vm430_vm0, %v107_v26 }
  0x2b   :  { %2322 = vmatprep.subr.msk.bf16.mxu1 %vm430_vm0, %v123_v30  ;;  %272 = vperm.xlu0 %2328, %v174_v36  }
  0x2c   :  { %277 = vperm.xlu1 %2329, %v175_v42  }
  0x2f   :  { %282 = vperm.xlu0 %2328, %v176_v45  }
  0x30   :  { %287 = vperm.xlu1 %2329, %v177_v52  }
  0x31   :  { %2224 = vmatpush3.bf16.xpose.msra.mxu0 %v495_v43 }
  0x32   :  { %2272 = vmatpush3.bf16.xpose.msra.mxu1 %v543_v46  ;;  %2315 = vmatprep.subr.msk.bf16.mxu0 %vm430_vm0, %v108_v44 }
  0x33   :  { %2323 = vmatprep.subr.msk.bf16.mxu1 %vm430_vm0, %v124_v47  ;;  %292 = vperm.xlu0 %2328, %v178_v55  }
  0x34   :  { %297 = vperm.xlu1 %2329, %v179_v60  }
  0x37   :  { %302 = vperm.xlu0 %2328, %v180_v63  }
  0x38   :  { %307 = vperm.xlu1 %2329, %v181_v6  }
  0x39   :  { %2226 = vmatpush3.bf16.xpose.msra.mxu0 %v498_v61 }
  0x3a   :  { %2274 = vmatpush3.bf16.xpose.msra.mxu1 %v546_v0  ;;  %2316 = vmatprep.subr.msk.bf16.mxu0 %vm430_vm0, %v109_v62 }
  0x3b   :  { %2324 = vmatprep.subr.msk.bf16.mxu1 %vm430_vm0, %v125_v1  ;;  %312 = vperm.xlu0 %2328, %v182_v8  }
  0x3c   :  { %317 = vperm.xlu1 %2329, %v183_v10  }
  0x3f   :  { %322 = vperm.xlu0 %2328, %v184_v12  }
  0x40   :  { %327 = vperm.xlu1 %2329, %v185_v14  }
  0x41   :  { %2228 = vmatpush3.bf16.xpose.msra.mxu0 %v501_v11 }
  0x42   :  { %2276 = vmatpush3.bf16.xpose.msra.mxu1 %v549_v13 }
  0x43   :  { %14 = vsyncpa [#allocation4], 0  ;;  %v2331_v17 = vld [vmem:[%s3189_s1 + $0x8] sm:$0xff]   ;;  %332 = vperm.xlu0 %2328, %v186_v15   ;;  %v188_v19 = vld [vmem:[%s3190_s2 + $0xf0] sm:$0xff] }
  0x44   :  { %v187_v18 = vld [vmem:[%s3190_s2 + $0xe8] sm:$0xff]  ;;  %v189_v20 = vld [vmem:[%s3190_s2 + $0xf8] sm:$0xff]  ;;  %v1297_v21 = vld [vmem:[%s3192_s4] sm:$0xff] }
  0x45   :  { %337 = vperm.xlu1 %2329, %v187_v18   ;;  %v2332_v22 = vld [vmem:[%s3189_s1 + $0x10] sm:$0xff]   ;;  %v1300_v24 = vld [vmem:[%s3192_s4 + $0x18] sm:$0xff]  ;;  %v1301_v25 = vld [vmem:[%s3192_s4 + $0x20] sm:$0xff] }
  0x46   :  { %v1299_v23 = vld [vmem:[%s3192_s4 + $0x10] sm:$0xff]  ;;  %v2333_v26 = vld [vmem:[%s3189_s1 + $0x18] sm:$0xff]   ;;  %v1827_v27 = vld [vmem:[%s3193_s5] sm:$0xff] }
  0x47   :  { %342 = vperm.xlu0 %2328, %v188_v19   ;;  %v1828_v28 = vld [vmem:[%s3193_s5 + $0x8] sm:$0xff]  ;;  %v1829_v30 = vld [vmem:[%s3193_s5 + $0x10] sm:$0xff]  ;;  %v2334_v31 = vld [vmem:[%s3189_s1 + $0x20] sm:$0xff]  }
  0x48   :  { %2230 = vmatmul.mubr.msk.bf16.vlgmr.msra.gmra.mrb[0].mxu0 %vm430_vm0, %v2623_v16  ;;  %v1302_v29 = vld [vmem:[%s3192_s4 + $0x28] sm:$0xff]  ;;  %v1303_v32 = vld [vmem:[%s3192_s4 + $0x30] sm:$0xff]  ;;  %v1830_v33 = vld [vmem:[%s3193_s5 + $0x18] sm:$0xff] }
  0x49   :  { %2278 = vmatmul.mubr.msk.bf16.vlgmr.msra.gmra.mrb[0].mxu1 %vm430_vm0, %v2623_v16  ;;  %2231 = vmatprep.mubr.msk.bf16.mxu0 %vm430_vm0, %v2331_v17  ;;  %v1298_v16 = vld [vmem:[%s3192_s4 + $0x8] sm:$0xff]  ;;  %v1304_v34 = vld [vmem:[%s3192_s4 + $0x38] sm:$0xff]  ;;  %v1831_v35 = vld [vmem:[%s3193_s5 + $0x20] sm:$0xff] }
  0x4a   :  { %2279 = vmatprep.mubr.msk.bf16.mxu1 %vm430_vm0, %v2331_v17  ;;  %347 = vperm.xlu1 %2329, %v189_v20   ;;  %v2335_v36 = vld [vmem:[%s3189_s1 + $0x28] sm:$0xff]   ;;  %v1305_v37 = vld [vmem:[%s3192_s4 + $0x40] sm:$0xff]  ;;  %v1833_v40 = vld [vmem:[%s3193_s5 + $0x30] sm:$0xff] }
  0x4b   :  { %1315 = vperm.xlu0 %2328, %v1297_v21   ;;  %v1832_v38 = vld [vmem:[%s3193_s5 + $0x28] sm:$0xff]  ;;  %v2336_v41 = vld [vmem:[%s3189_s1 + $0x30] sm:$0xff]   ;;  %v1834_v43 = vld [vmem:[%s3193_s5 + $0x38] sm:$0xff] }
  0x4c   :  { %v1306_v39 = vld [vmem:[%s3192_s4 + $0x48] sm:$0xff]  ;;  %v1307_v42 = vld [vmem:[%s3192_s4 + $0x50] sm:$0xff]  ;;  %v1308_v44 = vld [vmem:[%s3192_s4 + $0x58] sm:$0xff] }
  0x4d   :  { %v1835_v45 = vld [vmem:[%s3193_s5 + $0x40] sm:$0xff]  ;;  %v2337_v46 = vld [vmem:[%s3189_s1 + $0x38] sm:$0xff]   ;;  %v1836_v48 = vld [vmem:[%s3193_s5 + $0x48] sm:$0xff] }
  0x4e   :  { %1320 = vperm.xlu1 %2329, %v1298_v16   ;;  %v1309_v47 = vld [vmem:[%s3192_s4 + $0x60] sm:$0xff]  ;;  %v1310_v49 = vld [vmem:[%s3192_s4 + $0x68] sm:$0xff]  ;;  %v1837_v50 = vld [vmem:[%s3193_s5 + $0x50] sm:$0xff] }
  0x4f   :  { %1325 = vperm.xlu0 %2328, %v1299_v23   ;;  %v2338_v51 = vld [vmem:[%s3189_s1 + $0x40] sm:$0xff]   ;;  %v1311_v52 = vld [vmem:[%s3192_s4 + $0x70] sm:$0xff]  ;;  %v1838_v53 = vld [vmem:[%s3193_s5 + $0x58] sm:$0xff] }
  0x50   :  { %2232 = vmatmul.mubr.msk.bf16.gmra.mrb[4].mxu0 %vm430_vm0, %v2331_v17  ;;  %v1312_v54 = vld [vmem:[%s3192_s4 + $0x78] sm:$0xff]  ;;  %v1839_v55 = vld [vmem:[%s3193_s5 + $0x60] sm:$0xff]  ;;  %v2339_v56 = vld [vmem:[%s3189_s1 + $0x48] sm:$0xff]  }
  0x51   :  { %2280 = vmatmul.mubr.msk.bf16.gmra.mrb[4].mxu1 %vm430_vm0, %v2331_v17  ;;  %2233 = vmatprep.mubr.msk.bf16.mxu0 %vm430_vm0, %v2332_v22  ;;  %v1840_v57 = vld [vmem:[%s3193_s5 + $0x68] sm:$0xff]  ;;  %v1841_v58 = vld [vmem:[%s3193_s5 + $0x70] sm:$0xff]  ;;  %v1842_v59 = vld [vmem:[%s3193_s5 + $0x78] sm:$0xff] }
  0x52   :  { %2281 = vmatprep.mubr.msk.bf16.mxu1 %vm430_vm0, %v2332_v22  ;;  %1330 = vperm.xlu1 %2329, %v1300_v24   ;;  %v2071_v60 = vld [vmem:[#allocation2] sm:$0x1]  ;;  %v2340_v61 = vld [vmem:[%s3189_s1 + $0x50] sm:$0xff]   ;;  %v2341_v62 = vld [vmem:[%s3189_s1 + $0x58] sm:$0xff]  }
  0x53   :  { %1335 = vperm.xlu0 %2328, %v1301_v25   ;;  %v2342_v63 = vld [vmem:[%s3189_s1 + $0x60] sm:$0xff]   ;;  %v2343_v0 = vld [vmem:[%s3189_s1 + $0x68] sm:$0xff]   ;;  %v2344_v1 = vld [vmem:[%s3189_s1 + $0x70] sm:$0xff]  }
  0x54   :  { %v2345_v2 = vld [vmem:[%s3189_s1 + $0x78] sm:$0xff]  }
  0x56   :  { %1845 = vperm.xlu1 %2329, %v1827_v27  }
  0x57   :  { %1850 = vperm.xlu0 %2328, %v1828_v28  }
  0x58   :  { %2234 = vmatmul.mubr.msk.bf16.gmra.mrb[8].mxu0 %vm430_vm0, %v2332_v22 }
  0x59   :  { %2282 = vmatmul.mubr.msk.bf16.gmra.mrb[8].mxu1 %vm430_vm0, %v2332_v22  ;;  %2235 = vmatprep.mubr.msk.bf16.mxu0 %vm430_vm0, %v2333_v26 }
  0x5a   :  { %2283 = vmatprep.mubr.msk.bf16.mxu1 %vm430_vm0, %v2333_v26  ;;  %1340 = vperm.xlu1 %2329, %v1302_v29  }
  0x5b   :  { %1855 = vperm.xlu0 %2328, %v1829_v30  }
  0x5e   :  { %1345 = vperm.xlu1 %2329, %v1303_v32  }
  0x5f   :  { %1860 = vperm.xlu0 %2328, %v1830_v33   ;;  %v2348_v33 = vld [vmem:[%s3191_s3 + $0x4] ss:$8 sps:$4 sm:$0xff]  }
  0x60   :  { %2236 = vmatmul.mubr.msk.bf16.gmra.mrb[12].mxu0 %vm430_vm0, %v2333_v26 }
  0x61   :  { %2284 = vmatmul.mubr.msk.bf16.gmra.mrb[12].mxu1 %vm430_vm0, %v2333_v26  ;;  %2237 = vmatprep.mubr.msk.bf16.mxu0 %vm430_vm0, %v2334_v31 }
  0x62   :  { %2285 = vmatprep.mubr.msk.bf16.mxu1 %vm430_vm0, %v2334_v31  ;;  %1350 = vperm.xlu1 %2329, %v1304_v34  }
  0x63   :  { %1865 = vperm.xlu0 %2328, %v1831_v35  }
  0x66   :  { %1355 = vperm.xlu1 %2329, %v1305_v37  }
  0x67   :  { %1870 = vperm.xlu0 %2328, %v1832_v38  }
  0x68   :  { %2238 = vmatmul.mubr.msk.bf16.gmra.mrb[16].mxu0 %vm430_vm0, %v2334_v31 }
  0x69   :  { %2286 = vmatmul.mubr.msk.bf16.gmra.mrb[16].mxu1 %vm430_vm0, %v2334_v31  ;;  %2239 = vmatprep.mubr.msk.bf16.mxu0 %vm430_vm0, %v2335_v36 }
  0x6a   :  { %2287 = vmatprep.mubr.msk.bf16.mxu1 %vm430_vm0, %v2335_v36  ;;  %1360 = vperm.xlu1 %2329, %v1306_v39  }
  0x6b   :  { %1875 = vperm.xlu0 %2328, %v1833_v40  }
  0x6e   :  { %1365 = vperm.xlu1 %2329, %v1307_v42  }
  0x6f   :  { %1880 = vperm.xlu0 %2328, %v1834_v43  }
  0x70   :  { %2240 = vmatmul.mubr.msk.bf16.gmra.mrb[20].mxu0 %vm430_vm0, %v2335_v36 }
  0x71   :  { %2288 = vmatmul.mubr.msk.bf16.gmra.mrb[20].mxu1 %vm430_vm0, %v2335_v36  ;;  %2241 = vmatprep.mubr.msk.bf16.mxu0 %vm430_vm0, %v2336_v41 }
  0x72   :  { %2289 = vmatprep.mubr.msk.bf16.mxu1 %vm430_vm0, %v2336_v41  ;;  %1370 = vperm.xlu1 %2329, %v1308_v44  }
  0x73   :  { %1885 = vperm.xlu0 %2328, %v1835_v45  }
  0x76   :  { %1375 = vperm.xlu1 %2329, %v1309_v47  }
  0x77   :  { %1890 = vperm.xlu0 %2328, %v1836_v48  }
  0x78   :  { %2242 = vmatmul.mubr.msk.bf16.gmra.mrb[24].mxu0 %vm430_vm0, %v2336_v41 }
  0x79   :  { %2290 = vmatmul.mubr.msk.bf16.gmra.mrb[24].mxu1 %vm430_vm0, %v2336_v41  ;;  %2243 = vmatprep.mubr.msk.bf16.mxu0 %vm430_vm0, %v2337_v46 }
  0x7a   :  { %2291 = vmatprep.mubr.msk.bf16.mxu1 %vm430_vm0, %v2337_v46  ;;  %1380 = vperm.xlu1 %2329, %v1310_v49  }
  0x7b   :  { %1895 = vperm.xlu0 %2328, %v1837_v50  }
  0x7e   :  { %1385 = vperm.xlu1 %2329, %v1311_v52  }
  0x7f   :  { %1900 = vperm.xlu0 %2328, %v1838_v53  }
  0x80   :  { %2244 = vmatmul.mubr.msk.bf16.gmra.mrb[28].mxu0 %vm430_vm0, %v2337_v46 }
  0x81   :  { %2292 = vmatmul.mubr.msk.bf16.gmra.mrb[28].mxu1 %vm430_vm0, %v2337_v46  ;;  %2245 = vmatprep.mubr.msk.bf16.mxu0 %vm430_vm0, %v2338_v51 }
  0x82   :  { %2293 = vmatprep.mubr.msk.bf16.mxu1 %vm430_vm0, %v2338_v51  ;;  %1390 = vperm.xlu1 %2329, %v1312_v54  }
  0x83   :  { %1905 = vperm.xlu0 %2328, %v1839_v55  }
  0x86   :  { %1910 = vperm.xlu1 %2329, %v1840_v57  }
  0x87   :  { %1915 = vperm.xlu0 %2328, %v1841_v58  }
  0x88   :  { %2246 = vmatmul.mubr.msk.bf16.gmra.mrb[32].mxu0 %vm430_vm0, %v2338_v51 }
  0x89   :  { %2294 = vmatmul.mubr.msk.bf16.gmra.mrb[32].mxu1 %vm430_vm0, %v2338_v51  ;;  %2247 = vmatprep.mubr.msk.bf16.mxu0 %vm430_vm0, %v2339_v56 }
  0x8a   :  { %2295 = vmatprep.mubr.msk.bf16.mxu1 %vm430_vm0, %v2339_v56  ;;  %1920 = vperm.xlu1 %2329, %v1842_v59   ;;  %v193_v3 = vpop.permute.xlu0 %192 }
  0x8b   :  { %2074 = vperm.xlu0 %2328, %v2071_v60   ;;  %v203_v4 = vpop.permute.xlu1 %202 }
  0x8e   :  { %v198_v5 = vpop.permute.xlu0 %197 }
  0x8f   :  { %v208_v34 = vpop.permute.xlu1 %207 }
  0x90   :  { %2248 = vmatmul.mubr.msk.bf16.gmra.mrb[36].mxu0 %vm430_vm0, %v2339_v56 }
  0x91   :  { %2296 = vmatmul.mubr.msk.bf16.gmra.mrb[36].mxu1 %vm430_vm0, %v2339_v56  ;;  %2249 = vmatprep.mubr.msk.bf16.mxu0 %vm430_vm0, %v2340_v61 }
  0x92   :  { %2297 = vmatprep.mubr.msk.bf16.mxu1 %vm430_vm0, %v2340_v61 }
  0x98   :  { %2250 = vmatmul.mubr.msk.bf16.gmra.mrb[40].mxu0 %vm430_vm0, %v2340_v61 }
  0x99   :  { %2298 = vmatmul.mubr.msk.bf16.gmra.mrb[40].mxu1 %vm430_vm0, %v2340_v61  ;;  %2251 = vmatprep.mubr.msk.bf16.mxu0 %vm430_vm0, %v2341_v62 }
  0x9a   :  { %2299 = vmatprep.mubr.msk.bf16.mxu1 %vm430_vm0, %v2341_v62 }
  0xa0   :  { %2252 = vmatmul.mubr.msk.bf16.gmra.mrb[44].mxu0 %vm430_vm0, %v2341_v62 }
  0xa1   :  { %2300 = vmatmul.mubr.msk.bf16.gmra.mrb[44].mxu1 %vm430_vm0, %v2341_v62  ;;  %2253 = vmatprep.mubr.msk.bf16.mxu0 %vm430_vm0, %v2342_v63 }
  0xa2   :  { %2301 = vmatprep.mubr.msk.bf16.mxu1 %vm430_vm0, %v2342_v63 }
  0xa8   :  { %2254 = vmatmul.mubr.msk.bf16.gmra.mrb[48].mxu0 %vm430_vm0, %v2342_v63 }
  0xa9   :  { %2302 = vmatmul.mubr.msk.bf16.gmra.mrb[48].mxu1 %vm430_vm0, %v2342_v63  ;;  %2255 = vmatprep.mubr.msk.bf16.mxu0 %vm430_vm0, %v2343_v0 }
  0xaa   :  { %2303 = vmatprep.mubr.msk.bf16.mxu1 %vm430_vm0, %v2343_v0 }
  0xb0   :  { %2256 = vmatmul.mubr.msk.bf16.gmra.mrb[52].mxu0 %vm430_vm0, %v2343_v0 }
  0xb1   :  { %2304 = vmatmul.mubr.msk.bf16.gmra.mrb[52].mxu1 %vm430_vm0, %v2343_v0  ;;  %2257 = vmatprep.mubr.msk.bf16.mxu0 %vm430_vm0, %v2344_v1 }
  0xb2   :  { %2305 = vmatprep.mubr.msk.bf16.mxu1 %vm430_vm0, %v2344_v1 }
  0xb8   :  { %2258 = vmatmul.mubr.msk.bf16.gmra.mrb[56].mxu0 %vm430_vm0, %v2344_v1 }
  0xb9   :  { %2306 = vmatmul.mubr.msk.bf16.gmra.mrb[56].mxu1 %vm430_vm0, %v2344_v1  ;;  %2259 = vmatprep.mubr.msk.bf16.mxu0 %vm430_vm0, %v2345_v2 }
  0xba   :  { %2307 = vmatprep.mubr.msk.bf16.mxu1 %vm430_vm0, %v2345_v2 }
  0xc0   :  { %2260 = vmatmul.mubr.msk.bf16.gmra.mrb[60].mxu0 %vm430_vm0, %v2345_v2 }
  0xc1   :  { %2308 = vmatmul.mubr.msk.bf16.gmra.mrb[60].mxu1 %vm430_vm0, %v2345_v2  ;;  %1505 = vmatprep.mubr.bf16.mxu0 %v2348_v33 }
  0xc2   :  { %1618 = vmatprep.mubr.bf16.mxu1 %v2348_v33 }
 0x11b   :  { %v609_v6 = vpop.f32.mrb[0].mxu0 }
 0x11c   :  { %v610_v7 = vadd.f32 %v609_v6, %v193_v3  ;;  %v802_v8 = vpop.f32.mrb[0].mxu1  ;;  %v611_v9 = vpop.f32.mrb[1].mxu0 }
 0x11d   :  { %v803_v10 = vadd.f32 %v802_v8, %v193_v3  ;;  %v612_v11 = vadd.f32 %v611_v9, %v193_v3  ;;  %v804_v12 = vpop.f32.mrb[1].mxu1  ;;  %v613_v13 = vpop.f32.mrb[2].mxu0 }
 0x11e   :  { %v961_v14 = vmul.f32 0.2, %v610_v7  ;;  %v805_v15 = vadd.f32 %v804_v12, %v193_v3  ;;  %v614_v17 = vadd.f32 %v613_v13, %v198_v5  ;;  %v806_v18 = vpop.f32.mrb[2].mxu1  ;;  %v615_v19 = vpop.f32.mrb[3].mxu0 }
 0x11f   :  { %v963_v20 = vmul.f32 0.2, %v803_v10  ;;  %v962_v21 = vmul.f32 0.2, %v612_v11  ;;  %v807_v22 = vadd.f32 %v806_v18, %v198_v5  ;;  %v616_v16 = vadd.f32 %v615_v19, %v198_v5  ;;  %v808_v23 = vpop.f32.mrb[3].mxu1  ;;  %v213_v3 = vpop.permute.xlu0 %212 }
 0x120   :  { %v964_v24 = vmul.f32 0.2, %v805_v15  ;;  %v965_v25 = vmul.f32 0.2, %v614_v17  ;;  %v809_v26 = vadd.f32 %v808_v23, %v198_v5  ;;  %v1089_v29 = vmax.f32 %v610_v7, %v961_v14  ;;  %v218_v7 = vpop.permute.xlu1 %217 }
 0x121   :  { %v967_v27 = vmul.f32 0.2, %v807_v22  ;;  %v966_v28 = vmul.f32 0.2, %v616_v16  ;;  %v1091_v30 = vmax.f32 %v803_v10, %v963_v20  ;;  %v1090_v35 = vmax.f32 %v612_v11, %v962_v21 }
 0x122   :  { %v1093_v31 = vmax.f32 %v614_v17, %v965_v25  ;;  %v968_v32 = vmul.f32 0.2, %v809_v26  ;;  %v1092_v36 = vmax.f32 %v805_v15, %v964_v24 }
 0x123   :  { %v1095_v37 = vmax.f32 %v807_v22, %v967_v27  ;;  %v1094_v38 = vmax.f32 %v616_v16, %v966_v28  ;;  %v619_v39 = vpop.f32.mrb[4].mxu0 }
 0x124   :  { %v1233_v40 = vpack.c.bf16 %v1093_v31, %v1089_v29  ;;  %v1096_v41 = vmax.f32 %v809_v26, %v968_v32  ;;  %v620_v42 = vadd.f32 %v619_v39, %v203_v4  ;;  %v812_v43 = vpop.f32.mrb[4].mxu1  ;;  %v621_v44 = vpop.f32.mrb[5].mxu0 }
 0x125   :  { %v1235_v45 = vpack.c.bf16 %v1095_v37, %v1091_v30  ;;  %v813_v46 = vadd.f32 %v812_v43, %v203_v4  ;;  %v622_v47 = vadd.f32 %v621_v44, %v203_v4  ;;  %v814_v48 = vpop.f32.mrb[5].mxu1  ;;  %v623_v49 = vpop.f32.mrb[6].mxu0  ;;  %v1234_v50 = vpack.c.bf16 %v1094_v38, %v1090_v35 }
 0x126   :  { %v969_v51 = vmul.f32 0.2, %v620_v42  ;;  %v815_v52 = vadd.f32 %v814_v48, %v203_v4  ;;  %v624_v53 = vadd.f32 %v623_v49, %v208_v34  ;;  %v816_v54 = vpop.f32.mrb[6].mxu1  ;;  %v625_v55 = vpop.f32.mrb[7].mxu0  ;;  %v1236_v56 = vpack.c.bf16 %v1096_v41, %v1092_v36 }
 0x127   :  { %v971_v57 = vmul.f32 0.2, %v813_v46  ;;  %v970_v58 = vmul.f32 0.2, %v622_v47  ;;  %v817_v59 = vadd.f32 %v816_v54, %v208_v34  ;;  %v626_v60 = vadd.f32 %v625_v55, %v208_v34  ;;  %v818_v61 = vpop.f32.mrb[7].mxu1  ;;  %1473 = vmatprep.subr.bf16.mxu0 %v1234_v50  ;;  %v223_v41 = vpop.permute.xlu0 %222 }
 0x128   :  { %v972_v62 = vmul.f32 0.2, %v815_v52  ;;  %v973_v63 = vmul.f32 0.2, %v624_v53  ;;  %v819_v0 = vadd.f32 %v818_v61, %v208_v34  ;;  %1586 = vmatprep.subr.bf16.mxu1 %v1236_v56  ;;  %1474 = vmatpush1.bf16.msra.mxu0 %v1233_v40  ;;  %v1097_v4 = vmax.f32 %v620_v42, %v969_v51 }
 0x129   :  { %v975_v1 = vmul.f32 0.2, %v817_v59  ;;  %v974_v2 = vmul.f32 0.2, %v626_v60  ;;  %1587 = vmatpush1.bf16.msra.mxu1 %v1235_v45  ;;  %v1099_v8 = vmax.f32 %v813_v46, %v971_v57  ;;  %v1098_v9 = vmax.f32 %v622_v47, %v970_v58  ;;  %v228_v45 = vpop.permute.xlu1 %227 }
 0x12a   :  { %v1101_v5 = vmax.f32 %v624_v53, %v973_v63  ;;  %v976_v6 = vmul.f32 0.2, %v819_v0  ;;  %v1100_v13 = vmax.f32 %v815_v52, %v972_v62 }
 0x12b   :  { %v1103_v10 = vmax.f32 %v817_v59, %v975_v1  ;;  %v1102_v11 = vmax.f32 %v626_v60, %v974_v2  ;;  %v629_v12 = vpop.f32.mrb[8].mxu0 }
 0x12c   :  { %v1237_v14 = vpack.c.bf16 %v1101_v5, %v1097_v4  ;;  %v1104_v15 = vmax.f32 %v819_v0, %v976_v6  ;;  %v630_v17 = vadd.f32 %v629_v12, %v213_v3  ;;  %v822_v18 = vpop.f32.mrb[8].mxu1  ;;  %v631_v19 = vpop.f32.mrb[9].mxu0 }
 0x12d   :  { %v1239_v20 = vpack.c.bf16 %v1103_v10, %v1099_v8  ;;  %v823_v21 = vadd.f32 %v822_v18, %v213_v3  ;;  %v632_v22 = vadd.f32 %v631_v19, %v213_v3  ;;  %v824_v16 = vpop.f32.mrb[9].mxu1  ;;  %v633_v23 = vpop.f32.mrb[10].mxu0  ;;  %v1238_v24 = vpack.c.bf16 %v1102_v11, %v1098_v9 }
 0x12e   :  { %v977_v25 = vmul.f32 0.2, %v630_v17  ;;  %v825_v26 = vadd.f32 %v824_v16, %v213_v3  ;;  %v634_v27 = vadd.f32 %v633_v23, %v218_v7  ;;  %v826_v28 = vpop.f32.mrb[10].mxu1  ;;  %v635_v29 = vpop.f32.mrb[11].mxu0  ;;  %v1240_v30 = vpack.c.bf16 %v1104_v15, %v1100_v13 }
 0x12f   :  { %v979_v31 = vmul.f32 0.2, %v823_v21  ;;  %v978_v32 = vmul.f32 0.2, %v632_v22  ;;  %v827_v33 = vadd.f32 %v826_v28, %v218_v7  ;;  %v636_v34 = vadd.f32 %v635_v29, %v218_v7  ;;  %v828_v35 = vpop.f32.mrb[11].mxu1  ;;  %1475 = vmatprep.subr.bf16.mxu0 %v1238_v24  ;;  %v233_v15 = vpop.permute.xlu0 %232 }
 0x130   :  { %v980_v36 = vmul.f32 0.2, %v825_v26  ;;  %v981_v37 = vmul.f32 0.2, %v634_v27  ;;  %v829_v38 = vadd.f32 %v828_v35, %v218_v7  ;;  %1588 = vmatprep.subr.bf16.mxu1 %v1240_v30  ;;  %1476 = vmatpush1.bf16.msra.mxu0 %v1237_v14  ;;  %v1105_v42 = vmax.f32 %v630_v17, %v977_v25 }
 0x131   :  { %v983_v39 = vmul.f32 0.2, %v827_v33  ;;  %v982_v40 = vmul.f32 0.2, %v636_v34  ;;  %1589 = vmatpush1.bf16.msra.mxu1 %v1239_v20  ;;  %v1107_v46 = vmax.f32 %v823_v21, %v979_v31  ;;  %v1106_v47 = vmax.f32 %v632_v22, %v978_v32  ;;  %v238_v20 = vpop.permute.xlu1 %237 }
 0x132   :  { %v1109_v43 = vmax.f32 %v634_v27, %v981_v37  ;;  %v984_v44 = vmul.f32 0.2, %v829_v38  ;;  %v1108_v51 = vmax.f32 %v825_v26, %v980_v36 }
 0x133   :  { %v1111_v48 = vmax.f32 %v827_v33, %v983_v39  ;;  %v1110_v49 = vmax.f32 %v636_v34, %v982_v40  ;;  %v639_v50 = vpop.f32.mrb[12].mxu0 }
 0x134   :  { %v1241_v52 = vpack.c.bf16 %v1109_v43, %v1105_v42  ;;  %v1112_v53 = vmax.f32 %v829_v38, %v984_v44  ;;  %v640_v54 = vadd.f32 %v639_v50, %v223_v41  ;;  %v832_v55 = vpop.f32.mrb[12].mxu1  ;;  %v641_v56 = vpop.f32.mrb[13].mxu0 }
 0x135   :  { %v1243_v57 = vpack.c.bf16 %v1111_v48, %v1107_v46  ;;  %v833_v58 = vadd.f32 %v832_v55, %v223_v41  ;;  %v642_v59 = vadd.f32 %v641_v56, %v223_v41  ;;  %v834_v60 = vpop.f32.mrb[13].mxu1  ;;  %v643_v61 = vpop.f32.mrb[14].mxu0  ;;  %v1242_v62 = vpack.c.bf16 %v1110_v49, %v1106_v47 }
 0x136   :  { %v985_v63 = vmul.f32 0.2, %v640_v54  ;;  %v835_v0 = vadd.f32 %v834_v60, %v223_v41  ;;  %v644_v1 = vadd.f32 %v643_v61, %v228_v45  ;;  %v836_v2 = vpop.f32.mrb[14].mxu1  ;;  %v645_v3 = vpop.f32.mrb[15].mxu0  ;;  %v1244_v4 = vpack.c.bf16 %v1112_v53, %v1108_v51 }
 0x137   :  { %v987_v5 = vmul.f32 0.2, %v833_v58  ;;  %v986_v6 = vmul.f32 0.2, %v642_v59  ;;  %v837_v7 = vadd.f32 %v836_v2, %v228_v45  ;;  %v646_v8 = vadd.f32 %v645_v3, %v228_v45  ;;  %v838_v9 = vpop.f32.mrb[15].mxu1  ;;  %1477 = vmatprep.subr.bf16.mxu0 %v1242_v62  ;;  %v243_v53 = vpop.permute.xlu0 %242 }
 0x138   :  { %v988_v10 = vmul.f32 0.2, %v835_v0  ;;  %v989_v11 = vmul.f32 0.2, %v644_v1  ;;  %v839_v12 = vadd.f32 %v838_v9, %v228_v45  ;;  %1590 = vmatprep.subr.bf16.mxu1 %v1244_v4  ;;  %1478 = vmatpush1.bf16.msra.mxu0 %v1241_v52  ;;  %v1113_v17 = vmax.f32 %v640_v54, %v985_v63 }
 0x139   :  { %v991_v13 = vmul.f32 0.2, %v837_v7  ;;  %v990_v14 = vmul.f32 0.2, %v646_v8  ;;  %1591 = vmatpush1.bf16.msra.mxu1 %v1243_v57  ;;  %v1115_v21 = vmax.f32 %v833_v58, %v987_v5  ;;  %v1114_v22 = vmax.f32 %v642_v59, %v986_v6  ;;  %v248_v57 = vpop.permute.xlu1 %247 }
 0x13a   :  { %v1117_v18 = vmax.f32 %v644_v1, %v989_v11  ;;  %v992_v19 = vmul.f32 0.2, %v839_v12  ;;  %v1116_v25 = vmax.f32 %v835_v0, %v988_v10 }
 0x13b   :  { %v1119_v16 = vmax.f32 %v837_v7, %v991_v13  ;;  %v1118_v23 = vmax.f32 %v646_v8, %v990_v14  ;;  %v649_v24 = vpop.f32.mrb[16].mxu0 }
 0x13c   :  { %v1245_v26 = vpack.c.bf16 %v1117_v18, %v1113_v17  ;;  %v1120_v27 = vmax.f32 %v839_v12, %v992_v19  ;;  %v650_v28 = vadd.f32 %v649_v24, %v233_v15  ;;  %v842_v29 = vpop.f32.mrb[16].mxu1  ;;  %v651_v30 = vpop.f32.mrb[17].mxu0 }
 0x13d   :  { %v1247_v31 = vpack.c.bf16 %v1119_v16, %v1115_v21  ;;  %v843_v32 = vadd.f32 %v842_v29, %v233_v15  ;;  %v652_v33 = vadd.f32 %v651_v30, %v233_v15  ;;  %v844_v34 = vpop.f32.mrb[17].mxu1  ;;  %v653_v35 = vpop.f32.mrb[18].mxu0  ;;  %v1246_v36 = vpack.c.bf16 %v1118_v23, %v1114_v22 }
 0x13e   :  { %v993_v37 = vmul.f32 0.2, %v650_v28  ;;  %v845_v38 = vadd.f32 %v844_v34, %v233_v15  ;;  %v654_v39 = vadd.f32 %v653_v35, %v238_v20  ;;  %v846_v40 = vpop.f32.mrb[18].mxu1  ;;  %v655_v41 = vpop.f32.mrb[19].mxu0  ;;  %v1248_v42 = vpack.c.bf16 %v1120_v27, %v1116_v25 }
 0x13f   :  { %v995_v43 = vmul.f32 0.2, %v843_v32  ;;  %v994_v44 = vmul.f32 0.2, %v652_v33  ;;  %v847_v45 = vadd.f32 %v846_v40, %v238_v20  ;;  %v656_v46 = vadd.f32 %v655_v41, %v238_v20  ;;  %v848_v47 = vpop.f32.mrb[19].mxu1  ;;  %1479 = vmatprep.subr.bf16.mxu0 %v1246_v36  ;;  %v253_v27 = vpop.permute.xlu0 %252 }
 0x140   :  { %v996_v48 = vmul.f32 0.2, %v845_v38  ;;  %v997_v49 = vmul.f32 0.2, %v654_v39  ;;  %v849_v50 = vadd.f32 %v848_v47, %v238_v20  ;;  %1592 = vmatprep.subr.bf16.mxu1 %v1248_v42  ;;  %1480 = vmatpush1.bf16.msra.mxu0 %v1245_v26  ;;  %v1121_v54 = vmax.f32 %v650_v28, %v993_v37 }
 0x141   :  { %v999_v51 = vmul.f32 0.2, %v847_v45  ;;  %v998_v52 = vmul.f32 0.2, %v656_v46  ;;  %1593 = vmatpush1.bf16.msra.mxu1 %v1247_v31  ;;  %v1123_v58 = vmax.f32 %v843_v32, %v995_v43  ;;  %v1122_v59 = vmax.f32 %v652_v33, %v994_v44  ;;  %v258_v31 = vpop.permute.xlu1 %257 }
 0x142   :  { %v1125_v55 = vmax.f32 %v654_v39, %v997_v49  ;;  %v1000_v56 = vmul.f32 0.2, %v849_v50  ;;  %v1124_v63 = vmax.f32 %v845_v38, %v996_v48 }
 0x143   :  { %v1127_v60 = vmax.f32 %v847_v45, %v999_v51  ;;  %v1126_v61 = vmax.f32 %v656_v46, %v998_v52  ;;  %v659_v62 = vpop.f32.mrb[20].mxu0 }
 0x144   :  { %v1249_v0 = vpack.c.bf16 %v1125_v55, %v1121_v54  ;;  %v1128_v1 = vmax.f32 %v849_v50, %v1000_v56  ;;  %v660_v2 = vadd.f32 %v659_v62, %v243_v53  ;;  %v852_v3 = vpop.f32.mrb[20].mxu1  ;;  %v661_v4 = vpop.f32.mrb[21].mxu0 }
 0x145   :  { %v1251_v5 = vpack.c.bf16 %v1127_v60, %v1123_v58  ;;  %v853_v6 = vadd.f32 %v852_v3, %v243_v53  ;;  %v662_v7 = vadd.f32 %v661_v4, %v243_v53  ;;  %v854_v8 = vpop.f32.mrb[21].mxu1  ;;  %v663_v9 = vpop.f32.mrb[22].mxu0  ;;  %v1250_v10 = vpack.c.bf16 %v1126_v61, %v1122_v59 }
 0x146   :  { %v1001_v11 = vmul.f32 0.2, %v660_v2  ;;  %v855_v12 = vadd.f32 %v854_v8, %v243_v53  ;;  %v664_v13 = vadd.f32 %v663_v9, %v248_v57  ;;  %v856_v14 = vpop.f32.mrb[22].mxu1  ;;  %v665_v15 = vpop.f32.mrb[23].mxu0  ;;  %v1252_v17 = vpack.c.bf16 %v1128_v1, %v1124_v63 }
 0x147   :  { %v1003_v18 = vmul.f32 0.2, %v853_v6  ;;  %v1002_v19 = vmul.f32 0.2, %v662_v7  ;;  %v857_v20 = vadd.f32 %v856_v14, %v248_v57  ;;  %v666_v21 = vadd.f32 %v665_v15, %v248_v57  ;;  %v858_v22 = vpop.f32.mrb[23].mxu1  ;;  %1481 = vmatprep.subr.bf16.mxu0 %v1250_v10  ;;  %v263_v1 = vpop.permute.xlu0 %262 }
 0x148   :  { %v1004_v16 = vmul.f32 0.2, %v855_v12  ;;  %v1005_v23 = vmul.f32 0.2, %v664_v13  ;;  %v859_v24 = vadd.f32 %v858_v22, %v248_v57  ;;  %1594 = vmatprep.subr.bf16.mxu1 %v1252_v17  ;;  %1482 = vmatpush1.bf16.msra.mxu0 %v1249_v0  ;;  %v1129_v28 = vmax.f32 %v660_v2, %v1001_v11 }
 0x149   :  { %v1007_v25 = vmul.f32 0.2, %v857_v20  ;;  %v1006_v26 = vmul.f32 0.2, %v666_v21  ;;  %1595 = vmatpush1.bf16.msra.mxu1 %v1251_v5  ;;  %v1131_v32 = vmax.f32 %v853_v6, %v1003_v18  ;;  %v1130_v33 = vmax.f32 %v662_v7, %v1002_v19  ;;  %v268_v5 = vpop.permute.xlu1 %267 }
 0x14a   :  { %v1133_v29 = vmax.f32 %v664_v13, %v1005_v23  ;;  %v1008_v30 = vmul.f32 0.2, %v859_v24  ;;  %v1132_v37 = vmax.f32 %v855_v12, %v1004_v16 }
 0x14b   :  { %v1135_v34 = vmax.f32 %v857_v20, %v1007_v25  ;;  %v1134_v35 = vmax.f32 %v666_v21, %v1006_v26  ;;  %v669_v36 = vpop.f32.mrb[24].mxu0 }
 0x14c   :  { %v1253_v38 = vpack.c.bf16 %v1133_v29, %v1129_v28  ;;  %v1136_v39 = vmax.f32 %v859_v24, %v1008_v30  ;;  %v670_v40 = vadd.f32 %v669_v36, %v253_v27  ;;  %v862_v41 = vpop.f32.mrb[24].mxu1  ;;  %v671_v42 = vpop.f32.mrb[25].mxu0 }
 0x14d   :  { %v1255_v43 = vpack.c.bf16 %v1135_v34, %v1131_v32  ;;  %v863_v44 = vadd.f32 %v862_v41, %v253_v27  ;;  %v672_v45 = vadd.f32 %v671_v42, %v253_v27  ;;  %v864_v46 = vpop.f32.mrb[25].mxu1  ;;  %v673_v47 = vpop.f32.mrb[26].mxu0  ;;  %v1254_v48 = vpack.c.bf16 %v1134_v35, %v1130_v33 }
 0x14e   :  { %v1009_v49 = vmul.f32 0.2, %v670_v40  ;;  %v865_v50 = vadd.f32 %v864_v46, %v253_v27  ;;  %v674_v51 = vadd.f32 %v673_v47, %v258_v31  ;;  %v866_v52 = vpop.f32.mrb[26].mxu1  ;;  %v675_v53 = vpop.f32.mrb[27].mxu0  ;;  %v1256_v54 = vpack.c.bf16 %v1136_v39, %v1132_v37 }
 0x14f   :  { %v1011_v55 = vmul.f32 0.2, %v863_v44  ;;  %v1010_v56 = vmul.f32 0.2, %v672_v45  ;;  %v867_v57 = vadd.f32 %v866_v52, %v258_v31  ;;  %v676_v58 = vadd.f32 %v675_v53, %v258_v31  ;;  %v868_v59 = vpop.f32.mrb[27].mxu1  ;;  %1483 = vmatprep.subr.bf16.mxu0 %v1254_v48  ;;  %v273_v39 = vpop.permute.xlu0 %272 }
 0x150   :  { %v1012_v60 = vmul.f32 0.2, %v865_v50  ;;  %v1013_v61 = vmul.f32 0.2, %v674_v51  ;;  %v869_v62 = vadd.f32 %v868_v59, %v258_v31  ;;  %1596 = vmatprep.subr.bf16.mxu1 %v1256_v54  ;;  %1484 = vmatpush1.bf16.msra.mxu0 %v1253_v38  ;;  %v1137_v2 = vmax.f32 %v670_v40, %v1009_v49 }
 0x151   :  { %v1015_v63 = vmul.f32 0.2, %v867_v57  ;;  %v1014_v0 = vmul.f32 0.2, %v676_v58  ;;  %1597 = vmatpush1.bf16.msra.mxu1 %v1255_v43  ;;  %v1139_v6 = vmax.f32 %v863_v44, %v1011_v55  ;;  %v1138_v7 = vmax.f32 %v672_v45, %v1010_v56  ;;  %v278_v43 = vpop.permute.xlu1 %277 }
 0x152   :  { %v1141_v3 = vmax.f32 %v674_v51, %v1013_v61  ;;  %v1016_v4 = vmul.f32 0.2, %v869_v62  ;;  %v1140_v11 = vmax.f32 %v865_v50, %v1012_v60 }
 0x153   :  { %v1143_v8 = vmax.f32 %v867_v57, %v1015_v63  ;;  %v1142_v9 = vmax.f32 %v676_v58, %v1014_v0  ;;  %v679_v10 = vpop.f32.mrb[28].mxu0 }
 0x154   :  { %v1257_v12 = vpack.c.bf16 %v1141_v3, %v1137_v2  ;;  %v1144_v13 = vmax.f32 %v869_v62, %v1016_v4  ;;  %v680_v14 = vadd.f32 %v679_v10, %v263_v1  ;;  %v872_v15 = vpop.f32.mrb[28].mxu1  ;;  %v681_v17 = vpop.f32.mrb[29].mxu0 }
 0x155   :  { %v1259_v18 = vpack.c.bf16 %v1143_v8, %v1139_v6  ;;  %v873_v19 = vadd.f32 %v872_v15, %v263_v1  ;;  %v682_v20 = vadd.f32 %v681_v17, %v263_v1  ;;  %v874_v21 = vpop.f32.mrb[29].mxu1  ;;  %v683_v22 = vpop.f32.mrb[30].mxu0  ;;  %v1258_v16 = vpack.c.bf16 %v1142_v9, %v1138_v7 }
 0x156   :  { %v1017_v23 = vmul.f32 0.2, %v680_v14  ;;  %v875_v24 = vadd.f32 %v874_v21, %v263_v1  ;;  %v684_v25 = vadd.f32 %v683_v22, %v268_v5  ;;  %v876_v26 = vpop.f32.mrb[30].mxu1  ;;  %v685_v27 = vpop.f32.mrb[31].mxu0  ;;  %v1260_v28 = vpack.c.bf16 %v1144_v13, %v1140_v11 }
 0x157   :  { %v1019_v29 = vmul.f32 0.2, %v873_v19  ;;  %v1018_v30 = vmul.f32 0.2, %v682_v20  ;;  %v877_v31 = vadd.f32 %v876_v26, %v268_v5  ;;  %v686_v32 = vadd.f32 %v685_v27, %v268_v5  ;;  %v878_v33 = vpop.f32.mrb[31].mxu1  ;;  %1485 = vmatprep.subr.bf16.mxu0 %v1258_v16  ;;  %v283_v13 = vpop.permute.xlu0 %282 }
 0x158   :  { %v1020_v34 = vmul.f32 0.2, %v875_v24  ;;  %v1021_v35 = vmul.f32 0.2, %v684_v25  ;;  %v879_v36 = vadd.f32 %v878_v33, %v268_v5  ;;  %1598 = vmatprep.subr.bf16.mxu1 %v1260_v28  ;;  %1486 = vmatpush1.bf16.msra.mxu0 %v1257_v12  ;;  %v1145_v40 = vmax.f32 %v680_v14, %v1017_v23 }
 0x159   :  { %v1023_v37 = vmul.f32 0.2, %v877_v31  ;;  %v1022_v38 = vmul.f32 0.2, %v686_v32  ;;  %1599 = vmatpush1.bf16.msra.mxu1 %v1259_v18  ;;  %v1147_v44 = vmax.f32 %v873_v19, %v1019_v29  ;;  %v1146_v45 = vmax.f32 %v682_v20, %v1018_v30  ;;  %v288_v18 = vpop.permute.xlu1 %287 }
 0x15a   :  { %v1149_v41 = vmax.f32 %v684_v25, %v1021_v35  ;;  %v1024_v42 = vmul.f32 0.2, %v879_v36  ;;  %v1148_v49 = vmax.f32 %v875_v24, %v1020_v34 }
 0x15b   :  { %v1151_v46 = vmax.f32 %v877_v31, %v1023_v37  ;;  %v1150_v47 = vmax.f32 %v686_v32, %v1022_v38  ;;  %v689_v48 = vpop.f32.mrb[32].mxu0 }
 0x15c   :  { %v1261_v50 = vpack.c.bf16 %v1149_v41, %v1145_v40  ;;  %v1152_v51 = vmax.f32 %v879_v36, %v1024_v42  ;;  %v690_v52 = vadd.f32 %v689_v48, %v273_v39  ;;  %v882_v53 = vpop.f32.mrb[32].mxu1  ;;  %v691_v54 = vpop.f32.mrb[33].mxu0 }
 0x15d   :  { %v1263_v55 = vpack.c.bf16 %v1151_v46, %v1147_v44  ;;  %v883_v56 = vadd.f32 %v882_v53, %v273_v39  ;;  %v692_v57 = vadd.f32 %v691_v54, %v273_v39  ;;  %v884_v58 = vpop.f32.mrb[33].mxu1  ;;  %v693_v59 = vpop.f32.mrb[34].mxu0  ;;  %v1262_v60 = vpack.c.bf16 %v1150_v47, %v1146_v45 }
 0x15e   :  { %v1025_v61 = vmul.f32 0.2, %v690_v52  ;;  %v885_v62 = vadd.f32 %v884_v58, %v273_v39  ;;  %v694_v63 = vadd.f32 %v693_v59, %v278_v43  ;;  %v886_v0 = vpop.f32.mrb[34].mxu1  ;;  %v695_v1 = vpop.f32.mrb[35].mxu0  ;;  %v1264_v2 = vpack.c.bf16 %v1152_v51, %v1148_v49 }
 0x15f   :  { %v1027_v3 = vmul.f32 0.2, %v883_v56  ;;  %v1026_v4 = vmul.f32 0.2, %v692_v57  ;;  %v887_v5 = vadd.f32 %v886_v0, %v278_v43  ;;  %v696_v6 = vadd.f32 %v695_v1, %v278_v43  ;;  %v888_v7 = vpop.f32.mrb[35].mxu1  ;;  %1487 = vmatprep.subr.bf16.mxu0 %v1262_v60  ;;  %v293_v51 = vpop.permute.xlu0 %292 }
 0x160   :  { %v1028_v8 = vmul.f32 0.2, %v885_v62  ;;  %v1029_v9 = vmul.f32 0.2, %v694_v63  ;;  %v889_v10 = vadd.f32 %v888_v7, %v278_v43  ;;  %1600 = vmatprep.subr.bf16.mxu1 %v1264_v2  ;;  %1488 = vmatpush1.bf16.msra.mxu0 %v1261_v50  ;;  %v1153_v14 = vmax.f32 %v690_v52, %v1025_v61 }
 0x161   :  { %v1031_v11 = vmul.f32 0.2, %v887_v5  ;;  %v1030_v12 = vmul.f32 0.2, %v696_v6  ;;  %1601 = vmatpush1.bf16.msra.mxu1 %v1263_v55  ;;  %v1155_v19 = vmax.f32 %v883_v56, %v1027_v3  ;;  %v1154_v20 = vmax.f32 %v692_v57, %v1026_v4  ;;  %v298_v55 = vpop.permute.xlu1 %297 }
 0x162   :  { %v1157_v15 = vmax.f32 %v694_v63, %v1029_v9  ;;  %v1032_v17 = vmul.f32 0.2, %v889_v10  ;;  %v1156_v23 = vmax.f32 %v885_v62, %v1028_v8 }
 0x163   :  { %v1159_v21 = vmax.f32 %v887_v5, %v1031_v11  ;;  %v1158_v22 = vmax.f32 %v696_v6, %v1030_v12  ;;  %v699_v16 = vpop.f32.mrb[36].mxu0 }
 0x164   :  { %v1265_v24 = vpack.c.bf16 %v1157_v15, %v1153_v14  ;;  %v1160_v25 = vmax.f32 %v889_v10, %v1032_v17  ;;  %v700_v26 = vadd.f32 %v699_v16, %v283_v13  ;;  %v892_v27 = vpop.f32.mrb[36].mxu1  ;;  %v701_v28 = vpop.f32.mrb[37].mxu0 }
 0x165   :  { %v1267_v29 = vpack.c.bf16 %v1159_v21, %v1155_v19  ;;  %v893_v30 = vadd.f32 %v892_v27, %v283_v13  ;;  %v702_v31 = vadd.f32 %v701_v28, %v283_v13  ;;  %v894_v32 = vpop.f32.mrb[37].mxu1  ;;  %v703_v33 = vpop.f32.mrb[38].mxu0  ;;  %v1266_v34 = vpack.c.bf16 %v1158_v22, %v1154_v20 }
 0x166   :  { %v1033_v35 = vmul.f32 0.2, %v700_v26  ;;  %v895_v36 = vadd.f32 %v894_v32, %v283_v13  ;;  %v704_v37 = vadd.f32 %v703_v33, %v288_v18  ;;  %v896_v38 = vpop.f32.mrb[38].mxu1  ;;  %v705_v39 = vpop.f32.mrb[39].mxu0  ;;  %v1268_v40 = vpack.c.bf16 %v1160_v25, %v1156_v23 }
 0x167   :  { %v1035_v41 = vmul.f32 0.2, %v893_v30  ;;  %v1034_v42 = vmul.f32 0.2, %v702_v31  ;;  %v897_v43 = vadd.f32 %v896_v38, %v288_v18  ;;  %v706_v44 = vadd.f32 %v705_v39, %v288_v18  ;;  %v898_v45 = vpop.f32.mrb[39].mxu1  ;;  %1489 = vmatprep.subr.bf16.mxu0 %v1266_v34  ;;  %v303_v25 = vpop.permute.xlu0 %302 }
 0x168   :  { %v1036_v46 = vmul.f32 0.2, %v895_v36  ;;  %v1037_v47 = vmul.f32 0.2, %v704_v37  ;;  %v899_v48 = vadd.f32 %v898_v45, %v288_v18  ;;  %1602 = vmatprep.subr.bf16.mxu1 %v1268_v40  ;;  %1490 = vmatpush1.bf16.msra.mxu0 %v1265_v24  ;;  %v1161_v52 = vmax.f32 %v700_v26, %v1033_v35 }
 0x169   :  { %v1039_v49 = vmul.f32 0.2, %v897_v43  ;;  %v1038_v50 = vmul.f32 0.2, %v706_v44  ;;  %1603 = vmatpush1.bf16.msra.mxu1 %v1267_v29  ;;  %v1163_v56 = vmax.f32 %v893_v30, %v1035_v41  ;;  %v1162_v57 = vmax.f32 %v702_v31, %v1034_v42  ;;  %v308_v29 = vpop.permute.xlu1 %307 }
 0x16a   :  { %v1165_v53 = vmax.f32 %v704_v37, %v1037_v47  ;;  %v1040_v54 = vmul.f32 0.2, %v899_v48  ;;  %v1164_v61 = vmax.f32 %v895_v36, %v1036_v46 }
 0x16b   :  { %v1167_v58 = vmax.f32 %v897_v43, %v1039_v49  ;;  %v1166_v59 = vmax.f32 %v706_v44, %v1038_v50  ;;  %v709_v60 = vpop.f32.mrb[40].mxu0 }
 0x16c   :  { %v1269_v62 = vpack.c.bf16 %v1165_v53, %v1161_v52  ;;  %v1168_v63 = vmax.f32 %v899_v48, %v1040_v54  ;;  %v710_v0 = vadd.f32 %v709_v60, %v293_v51  ;;  %v902_v1 = vpop.f32.mrb[40].mxu1  ;;  %v711_v2 = vpop.f32.mrb[41].mxu0 }
 0x16d   :  { %v1271_v3 = vpack.c.bf16 %v1167_v58, %v1163_v56  ;;  %v903_v4 = vadd.f32 %v902_v1, %v293_v51  ;;  %v712_v5 = vadd.f32 %v711_v2, %v293_v51  ;;  %v904_v6 = vpop.f32.mrb[41].mxu1  ;;  %v713_v7 = vpop.f32.mrb[42].mxu0  ;;  %v1270_v8 = vpack.c.bf16 %v1166_v59, %v1162_v57 }
 0x16e   :  { %v1041_v9 = vmul.f32 0.2, %v710_v0  ;;  %v905_v10 = vadd.f32 %v904_v6, %v293_v51  ;;  %v714_v11 = vadd.f32 %v713_v7, %v298_v55  ;;  %v906_v12 = vpop.f32.mrb[42].mxu1  ;;  %v715_v13 = vpop.f32.mrb[43].mxu0  ;;  %v1272_v14 = vpack.c.bf16 %v1168_v63, %v1164_v61 }
 0x16f   :  { %v1043_v15 = vmul.f32 0.2, %v903_v4  ;;  %v1042_v17 = vmul.f32 0.2, %v712_v5  ;;  %v907_v18 = vadd.f32 %v906_v12, %v298_v55  ;;  %v716_v19 = vadd.f32 %v715_v13, %v298_v55  ;;  %v908_v20 = vpop.f32.mrb[43].mxu1  ;;  %1491 = vmatprep.subr.bf16.mxu0 %v1270_v8  ;;  %v313_v63 = vpop.permute.xlu0 %312 }
 0x170   :  { %v1044_v21 = vmul.f32 0.2, %v905_v10  ;;  %v1045_v22 = vmul.f32 0.2, %v714_v11  ;;  %v909_v16 = vadd.f32 %v908_v20, %v298_v55  ;;  %1604 = vmatprep.subr.bf16.mxu1 %v1272_v14  ;;  %1492 = vmatpush1.bf16.msra.mxu0 %v1269_v62  ;;  %v1169_v26 = vmax.f32 %v710_v0, %v1041_v9 }
 0x171   :  { %v1047_v23 = vmul.f32 0.2, %v907_v18  ;;  %v1046_v24 = vmul.f32 0.2, %v716_v19  ;;  %1605 = vmatpush1.bf16.msra.mxu1 %v1271_v3  ;;  %v1171_v30 = vmax.f32 %v903_v4, %v1043_v15  ;;  %v1170_v31 = vmax.f32 %v712_v5, %v1042_v17  ;;  %v318_v3 = vpop.permute.xlu1 %317 }
 0x172   :  { %v1173_v27 = vmax.f32 %v714_v11, %v1045_v22  ;;  %v1048_v28 = vmul.f32 0.2, %v909_v16  ;;  %v1172_v35 = vmax.f32 %v905_v10, %v1044_v21 }
 0x173   :  { %v1175_v32 = vmax.f32 %v907_v18, %v1047_v23  ;;  %v1174_v33 = vmax.f32 %v716_v19, %v1046_v24  ;;  %v719_v34 = vpop.f32.mrb[44].mxu0 }
 0x174   :  { %v1273_v36 = vpack.c.bf16 %v1173_v27, %v1169_v26  ;;  %v1176_v37 = vmax.f32 %v909_v16, %v1048_v28  ;;  %v720_v38 = vadd.f32 %v719_v34, %v303_v25  ;;  %v912_v39 = vpop.f32.mrb[44].mxu1  ;;  %v721_v40 = vpop.f32.mrb[45].mxu0 }
 0x175   :  { %v1275_v41 = vpack.c.bf16 %v1175_v32, %v1171_v30  ;;  %v913_v42 = vadd.f32 %v912_v39, %v303_v25  ;;  %v722_v43 = vadd.f32 %v721_v40, %v303_v25  ;;  %v914_v44 = vpop.f32.mrb[45].mxu1  ;;  %v723_v45 = vpop.f32.mrb[46].mxu0  ;;  %v1274_v46 = vpack.c.bf16 %v1174_v33, %v1170_v31 }
 0x176   :  { %v1049_v47 = vmul.f32 0.2, %v720_v38  ;;  %v915_v48 = vadd.f32 %v914_v44, %v303_v25  ;;  %v724_v49 = vadd.f32 %v723_v45, %v308_v29  ;;  %v916_v50 = vpop.f32.mrb[46].mxu1  ;;  %v725_v51 = vpop.f32.mrb[47].mxu0  ;;  %v1276_v52 = vpack.c.bf16 %v1176_v37, %v1172_v35 }
 0x177   :  { %v1051_v53 = vmul.f32 0.2, %v913_v42  ;;  %v1050_v54 = vmul.f32 0.2, %v722_v43  ;;  %v917_v55 = vadd.f32 %v916_v50, %v308_v29  ;;  %v726_v56 = vadd.f32 %v725_v51, %v308_v29  ;;  %v918_v57 = vpop.f32.mrb[47].mxu1  ;;  %1493 = vmatprep.subr.bf16.mxu0 %v1274_v46  ;;  %v323_v37 = vpop.permute.xlu0 %322 }
 0x178   :  { %v1052_v58 = vmul.f32 0.2, %v915_v48  ;;  %v1053_v59 = vmul.f32 0.2, %v724_v49  ;;  %v919_v60 = vadd.f32 %v918_v57, %v308_v29  ;;  %1606 = vmatprep.subr.bf16.mxu1 %v1276_v52  ;;  %1494 = vmatpush1.bf16.msra.mxu0 %v1273_v36  ;;  %v1177_v0 = vmax.f32 %v720_v38, %v1049_v47 }
 0x179   :  { %v1055_v61 = vmul.f32 0.2, %v917_v55  ;;  %v1054_v62 = vmul.f32 0.2, %v726_v56  ;;  %1607 = vmatpush1.bf16.msra.mxu1 %v1275_v41  ;;  %v1179_v4 = vmax.f32 %v913_v42, %v1051_v53  ;;  %v1178_v5 = vmax.f32 %v722_v43, %v1050_v54  ;;  %v328_v41 = vpop.permute.xlu1 %327 }
 0x17a   :  { %v1181_v1 = vmax.f32 %v724_v49, %v1053_v59  ;;  %v1056_v2 = vmul.f32 0.2, %v919_v60  ;;  %v1180_v9 = vmax.f32 %v915_v48, %v1052_v58 }
 0x17b   :  { %v1183_v6 = vmax.f32 %v917_v55, %v1055_v61  ;;  %v1182_v7 = vmax.f32 %v726_v56, %v1054_v62  ;;  %v729_v8 = vpop.f32.mrb[48].mxu0 }
 0x17c   :  { %v1277_v10 = vpack.c.bf16 %v1181_v1, %v1177_v0  ;;  %v1184_v11 = vmax.f32 %v919_v60, %v1056_v2  ;;  %v730_v12 = vadd.f32 %v729_v8, %v313_v63  ;;  %v922_v13 = vpop.f32.mrb[48].mxu1  ;;  %v731_v14 = vpop.f32.mrb[49].mxu0 }
 0x17d   :  { %v1279_v15 = vpack.c.bf16 %v1183_v6, %v1179_v4  ;;  %v923_v17 = vadd.f32 %v922_v13, %v313_v63  ;;  %v732_v18 = vadd.f32 %v731_v14, %v313_v63  ;;  %v924_v19 = vpop.f32.mrb[49].mxu1  ;;  %v733_v20 = vpop.f32.mrb[50].mxu0  ;;  %v1278_v21 = vpack.c.bf16 %v1182_v7, %v1178_v5 }
 0x17e   :  { %v1057_v22 = vmul.f32 0.2, %v730_v12  ;;  %v925_v16 = vadd.f32 %v924_v19, %v313_v63  ;;  %v734_v23 = vadd.f32 %v733_v20, %v318_v3  ;;  %v926_v24 = vpop.f32.mrb[50].mxu1  ;;  %v735_v25 = vpop.f32.mrb[51].mxu0  ;;  %v1280_v26 = vpack.c.bf16 %v1184_v11, %v1180_v9 }
 0x17f   :  { %v1059_v27 = vmul.f32 0.2, %v923_v17  ;;  %v1058_v28 = vmul.f32 0.2, %v732_v18  ;;  %v927_v29 = vadd.f32 %v926_v24, %v318_v3  ;;  %v736_v30 = vadd.f32 %v735_v25, %v318_v3  ;;  %v928_v31 = vpop.f32.mrb[51].mxu1  ;;  %1495 = vmatprep.subr.bf16.mxu0 %v1278_v21  ;;  %v333_v11 = vpop.permute.xlu0 %332 }
 0x180   :  { %v1060_v32 = vmul.f32 0.2, %v925_v16  ;;  %v1061_v33 = vmul.f32 0.2, %v734_v23  ;;  %v929_v34 = vadd.f32 %v928_v31, %v318_v3  ;;  %1608 = vmatprep.subr.bf16.mxu1 %v1280_v26  ;;  %1496 = vmatpush1.bf16.msra.mxu0 %v1277_v10  ;;  %v1185_v38 = vmax.f32 %v730_v12, %v1057_v22 }
 0x181   :  { %v1063_v35 = vmul.f32 0.2, %v927_v29  ;;  %v1062_v36 = vmul.f32 0.2, %v736_v30  ;;  %1609 = vmatpush1.bf16.msra.mxu1 %v1279_v15  ;;  %v1187_v42 = vmax.f32 %v923_v17, %v1059_v27  ;;  %v1186_v43 = vmax.f32 %v732_v18, %v1058_v28  ;;  %v338_v15 = vpop.permute.xlu1 %337 }
 0x182   :  { %v1189_v39 = vmax.f32 %v734_v23, %v1061_v33  ;;  %v1064_v40 = vmul.f32 0.2, %v929_v34  ;;  %v1188_v47 = vmax.f32 %v925_v16, %v1060_v32 }
 0x183   :  { %v1191_v44 = vmax.f32 %v927_v29, %v1063_v35  ;;  %v1190_v45 = vmax.f32 %v736_v30, %v1062_v36  ;;  %v739_v46 = vpop.f32.mrb[52].mxu0 }
 0x184   :  { %v1281_v48 = vpack.c.bf16 %v1189_v39, %v1185_v38  ;;  %v1192_v49 = vmax.f32 %v929_v34, %v1064_v40  ;;  %v740_v50 = vadd.f32 %v739_v46, %v323_v37  ;;  %v932_v51 = vpop.f32.mrb[52].mxu1  ;;  %v741_v52 = vpop.f32.mrb[53].mxu0 }
 0x185   :  { %v1283_v53 = vpack.c.bf16 %v1191_v44, %v1187_v42  ;;  %v933_v54 = vadd.f32 %v932_v51, %v323_v37  ;;  %v742_v55 = vadd.f32 %v741_v52, %v323_v37  ;;  %v934_v56 = vpop.f32.mrb[53].mxu1  ;;  %v743_v57 = vpop.f32.mrb[54].mxu0  ;;  %v1282_v58 = vpack.c.bf16 %v1190_v45, %v1186_v43 }
 0x186   :  { %v1065_v59 = vmul.f32 0.2, %v740_v50  ;;  %v935_v60 = vadd.f32 %v934_v56, %v323_v37  ;;  %v744_v61 = vadd.f32 %v743_v57, %v328_v41  ;;  %v936_v62 = vpop.f32.mrb[54].mxu1  ;;  %v745_v63 = vpop.f32.mrb[55].mxu0  ;;  %v1284_v0 = vpack.c.bf16 %v1192_v49, %v1188_v47 }
 0x187   :  { %v1067_v1 = vmul.f32 0.2, %v933_v54  ;;  %v1066_v2 = vmul.f32 0.2, %v742_v55  ;;  %v937_v3 = vadd.f32 %v936_v62, %v328_v41  ;;  %v746_v4 = vadd.f32 %v745_v63, %v328_v41  ;;  %v938_v5 = vpop.f32.mrb[55].mxu1  ;;  %1497 = vmatprep.subr.bf16.mxu0 %v1282_v58  ;;  %v343_v49 = vpop.permute.xlu0 %342 }
 0x188   :  { %v1068_v6 = vmul.f32 0.2, %v935_v60  ;;  %v1069_v7 = vmul.f32 0.2, %v744_v61  ;;  %v939_v8 = vadd.f32 %v938_v5, %v328_v41  ;;  %1610 = vmatprep.subr.bf16.mxu1 %v1284_v0  ;;  %1498 = vmatpush1.bf16.msra.mxu0 %v1281_v48  ;;  %v1193_v12 = vmax.f32 %v740_v50, %v1065_v59 }
 0x189   :  { %v1071_v9 = vmul.f32 0.2, %v937_v3  ;;  %v1070_v10 = vmul.f32 0.2, %v746_v4  ;;  %1611 = vmatpush1.bf16.msra.mxu1 %v1283_v53  ;;  %v1195_v17 = vmax.f32 %v933_v54, %v1067_v1  ;;  %v1194_v18 = vmax.f32 %v742_v55, %v1066_v2  ;;  %v348_v53 = vpop.permute.xlu1 %347 }
 0x18a   :  { %v1197_v13 = vmax.f32 %v744_v61, %v1069_v7  ;;  %v1072_v14 = vmul.f32 0.2, %v939_v8  ;;  %v1196_v22 = vmax.f32 %v935_v60, %v1068_v6 }
 0x18b   :  { %v1199_v19 = vmax.f32 %v937_v3, %v1071_v9  ;;  %v1198_v20 = vmax.f32 %v746_v4, %v1070_v10  ;;  %v749_v21 = vpop.f32.mrb[56].mxu0 }
 0x18c   :  { %v1285_v16 = vpack.c.bf16 %v1197_v13, %v1193_v12  ;;  %v1200_v23 = vmax.f32 %v939_v8, %v1072_v14  ;;  %v750_v24 = vadd.f32 %v749_v21, %v333_v11  ;;  %v942_v25 = vpop.f32.mrb[56].mxu1  ;;  %v751_v26 = vpop.f32.mrb[57].mxu0 }
 0x18d   :  { %v1287_v27 = vpack.c.bf16 %v1199_v19, %v1195_v17  ;;  %v943_v28 = vadd.f32 %v942_v25, %v333_v11  ;;  %v752_v29 = vadd.f32 %v751_v26, %v333_v11  ;;  %v944_v30 = vpop.f32.mrb[57].mxu1  ;;  %v753_v31 = vpop.f32.mrb[58].mxu0  ;;  %v1286_v32 = vpack.c.bf16 %v1198_v20, %v1194_v18 }
 0x18e   :  { %v1073_v33 = vmul.f32 0.2, %v750_v24  ;;  %v945_v34 = vadd.f32 %v944_v30, %v333_v11  ;;  %v754_v35 = vadd.f32 %v753_v31, %v338_v15  ;;  %v946_v36 = vpop.f32.mrb[58].mxu1  ;;  %v755_v37 = vpop.f32.mrb[59].mxu0  ;;  %v1288_v38 = vpack.c.bf16 %v1200_v23, %v1196_v22 }
 0x18f   :  { %v1075_v39 = vmul.f32 0.2, %v943_v28  ;;  %v1074_v40 = vmul.f32 0.2, %v752_v29  ;;  %v947_v41 = vadd.f32 %v946_v36, %v338_v15  ;;  %v756_v42 = vadd.f32 %v755_v37, %v338_v15  ;;  %v948_v43 = vpop.f32.mrb[59].mxu1  ;;  %1499 = vmatprep.subr.bf16.mxu0 %v1286_v32 }
 0x190   :  { %v1076_v44 = vmul.f32 0.2, %v945_v34  ;;  %v1077_v45 = vmul.f32 0.2, %v754_v35  ;;  %v949_v46 = vadd.f32 %v948_v43, %v338_v15  ;;  %1612 = vmatprep.subr.bf16.mxu1 %v1288_v38  ;;  %1500 = vmatpush1.bf16.msra.mxu0 %v1285_v16  ;;  %v1201_v50 = vmax.f32 %v750_v24, %v1073_v33  ;;  %v2346_v36 = vld [vmem:[%s3191_s3] ss:$8 sps:$4 sm:$0xff]  }
 0x191   :  { %v1079_v47 = vmul.f32 0.2, %v947_v41  ;;  %v1078_v48 = vmul.f32 0.2, %v756_v42  ;;  %1613 = vmatpush1.bf16.msra.mxu1 %v1287_v27  ;;  %v1203_v54 = vmax.f32 %v943_v28, %v1075_v39  ;;  %v1202_v55 = vmax.f32 %v752_v29, %v1074_v40  ;;  %v2349_v37 = vld [vmem:[%s3191_s3 + $0x14] ss:$8 sps:$4 sm:$0xff]  }
 0x192   :  { %v1205_v51 = vmax.f32 %v754_v35, %v1077_v45  ;;  %v1080_v52 = vmul.f32 0.2, %v949_v46  ;;  %v1204_v59 = vmax.f32 %v945_v34, %v1076_v44  ;;  %v2351_v38 = vld [vmem:[%s3191_s3 + $0x10] ss:$8 sps:$4 sm:$0xff]   ;;  %v2352_v39 = vld [vmem:[%s3191_s3 + $0x24] ss:$8 sps:$4 sm:$0xff]  }
 0x193   :  { %v1207_v56 = vmax.f32 %v947_v41, %v1079_v47  ;;  %v1206_v57 = vmax.f32 %v756_v42, %v1078_v48  ;;  %v759_v58 = vpop.f32.mrb[60].mxu0  ;;  %v2354_v40 = vld [vmem:[%s3191_s3 + $0x20] ss:$8 sps:$4 sm:$0xff]   ;;  %v2355_v41 = vld [vmem:[%s3191_s3 + $0x34] ss:$8 sps:$4 sm:$0xff]  }
 0x194   :  { %v1289_v60 = vpack.c.bf16 %v1205_v51, %v1201_v50  ;;  %v1208_v61 = vmax.f32 %v949_v46, %v1080_v52  ;;  %v760_v62 = vadd.f32 %v759_v58, %v343_v49  ;;  %v952_v63 = vpop.f32.mrb[60].mxu1  ;;  %v761_v0 = vpop.f32.mrb[61].mxu0  ;;  %v2357_v42 = vld [vmem:[%s3191_s3 + $0x30] ss:$8 sps:$4 sm:$0xff]   ;;  %v2358_v43 = vld [vmem:[%s3191_s3 + $0x44] ss:$8 sps:$4 sm:$0xff]  }
 0x195   :  { %v1291_v1 = vpack.c.bf16 %v1207_v56, %v1203_v54  ;;  %v953_v2 = vadd.f32 %v952_v63, %v343_v49  ;;  %v762_v3 = vadd.f32 %v761_v0, %v343_v49  ;;  %v954_v4 = vpop.f32.mrb[61].mxu1  ;;  %v763_v5 = vpop.f32.mrb[62].mxu0  ;;  %v1290_v6 = vpack.c.bf16 %v1206_v57, %v1202_v55  ;;  %v2360_v44 = vld [vmem:[%s3191_s3 + $0x40] ss:$8 sps:$4 sm:$0xff]   ;;  %v2361_v45 = vld [vmem:[%s3191_s3 + $0x54] ss:$8 sps:$4 sm:$0xff]  }
 0x196   :  { %v1081_v7 = vmul.f32 0.2, %v760_v62  ;;  %v955_v8 = vadd.f32 %v954_v4, %v343_v49  ;;  %v764_v9 = vadd.f32 %v763_v5, %v348_v53  ;;  %v956_v10 = vpop.f32.mrb[62].mxu1  ;;  %v765_v11 = vpop.f32.mrb[63].mxu0  ;;  %v1292_v12 = vpack.c.bf16 %v1208_v61, %v1204_v59  ;;  %v2363_v46 = vld [vmem:[%s3191_s3 + $0x50] ss:$8 sps:$4 sm:$0xff]  }
 0x197   :  { %v1083_v13 = vmul.f32 0.2, %v953_v2  ;;  %v1082_v14 = vmul.f32 0.2, %v762_v3  ;;  %v957_v15 = vadd.f32 %v956_v10, %v348_v53  ;;  %v766_v17 = vadd.f32 %v765_v11, %v348_v53  ;;  %v958_v18 = vpop.f32.mrb[63].mxu1  ;;  %1501 = vmatprep.subr.bf16.mxu0 %v1290_v6  ;;  %v1316_v51 = vpop.permute.xlu0 %1315 }
 0x198   :  { %v1084_v19 = vmul.f32 0.2, %v955_v8  ;;  %v1085_v20 = vmul.f32 0.2, %v764_v9  ;;  %v959_v21 = vadd.f32 %v958_v18, %v348_v53  ;;  %1614 = vmatprep.subr.bf16.mxu1 %v1292_v12  ;;  %1502 = vmatpush1.bf16.msra.mxu0 %v1289_v60  ;;  %v1209_v23 = vmax.f32 %v760_v62, %v1081_v7  ;;  %v2364_v47 = vld [vmem:[%s3191_s3 + $0x64] ss:$8 sps:$4 sm:$0xff]   ;;  %v1321_v52 = vpop.permute.xlu1 %1320 }
 0x199   :  { %v1087_v22 = vmul.f32 0.2, %v957_v15  ;;  %v1086_v16 = vmul.f32 0.2, %v766_v17  ;;  %1615 = vmatpush1.bf16.msra.mxu1 %v1291_v1  ;;  %v1211_v26 = vmax.f32 %v953_v2, %v1083_v13  ;;  %v1210_v27 = vmax.f32 %v762_v3, %v1082_v14  ;;  %v2366_v48 = vld [vmem:[%s3191_s3 + $0x60] ss:$8 sps:$4 sm:$0xff]  }
 0x19a   :  { %v1213_v24 = vmax.f32 %v764_v9, %v1085_v20  ;;  %v1088_v25 = vmul.f32 0.2, %v959_v21  ;;  %v1212_v30 = vmax.f32 %v955_v8, %v1084_v19  ;;  %v2367_v49 = vld [vmem:[%s3191_s3 + $0x74] ss:$8 sps:$4 sm:$0xff]   ;;  %v2369_v50 = vld [vmem:[%s3191_s3 + $0x70] ss:$8 sps:$4 sm:$0xff]  }
 0x19b   :  { %v1215_v28 = vmax.f32 %v957_v15, %v1087_v22  ;;  %v1214_v29 = vmax.f32 %v766_v17, %v1086_v16  ;;  %v3030_v53 = vpop.permute.xlu0 %1325  ;;  %s2404_s3 = smov [#allocation3]  }
 0x19c   :  { %v1293_v31 = vpack.c.bf16 %v1213_v24, %v1209_v23  ;;  %v1216_v32 = vmax.f32 %v959_v21, %v1088_v25  ;;  %v3032_v54 = vpop.permute.xlu1 %1330  ;;  %s2141_s17 = sshll.u32 %s2404_s3, 4  ;;  %s2142_s17 = int_to_ptr.vmem [resolvable:$true] %s2141_s17 }
 0x19d   :  { %v1295_v33 = vpack.c.bf16 %v1215_v28, %v1211_v26  ;;  %v1294_v34 = vpack.c.bf16 %v1214_v29, %v1210_v27  ;;  %s2378_s18 = scalar_lea.vmem %s2142_s17, 64  ;;  %p2383_p1 = scmp.lt.s32.totalorder %s2142_s17, %s2142_s17 }
 0x19e   :  { %v1296_v35 = vpack.c.bf16 %v1216_v32, %v1212_v30  ;;  %p2379_p0 = scmp.ne.s32.totalorder %s2142_s17, %s2378_s18  ;;  %p2384_p2 = scmp.lt.s32.totalorder %s2378_s18, %s2378_s18 }
 0x19f   :  { %1503 = vmatprep.subr.bf16.mxu0 %v1294_v34  ;;  %v3034_v55 = vpop.permute.xlu0 %1335 }
 0x1a0   :  { %1616 = vmatprep.subr.bf16.mxu1 %v1296_v35  ;;  %1504 = vmatpush1.bf16.msra.mxu0 %v1293_v31  ;;  %v1846_v56 = vpop.permute.xlu1 %1845  ;;  %p2385_p3 = por %p2384_p2, %p2383_p1 }
 0x1a1   :  { %1617 = vmatpush1.bf16.msra.mxu1 %v1295_v33 }
 0x1a2   :  { %p2386_p4 = pnand %p2385_p3, %p2379_p0 }
 0x1a3   :  { %1506 = vmatmul.mubr.bf16.vlgmr.msra.gmra.mrb[64].mxu0 %v2346_v36  ;;  %v1851_v57 = vpop.permute.xlu0 %1850 }
 0x1a4   :  { %1619 = vmatmul.mubr.bf16.vlgmr.msra.gmra.mrb[64].mxu1 %v2346_v36  ;;  %1515 = vmatprep.mubr.bf16.mxu0 %v2349_v37  ;;  %v3036_v58 = vpop.permute.xlu1 %1340 }
 0x1a5   :  { %1628 = vmatprep.mubr.bf16.mxu1 %v2349_v37 }
 0x1a7   :  { %v3038_v59 = vpop.permute.xlu0 %1855 }
 0x1a8   :  { %v3040_v60 = vpop.permute.xlu1 %1345 }
 0x1ab   :  { %1516 = vmatmul.mubr.bf16.gmra.mrb[68].mxu0 %v2351_v38  ;;  %v3042_v61 = vpop.permute.xlu0 %1860 }
 0x1ac   :  { %1629 = vmatmul.mubr.bf16.gmra.mrb[68].mxu1 %v2351_v38  ;;  %1525 = vmatprep.mubr.bf16.mxu0 %v2352_v39  ;;  %v3044_v62 = vpop.permute.xlu1 %1350 }
 0x1ad   :  { %1638 = vmatprep.mubr.bf16.mxu1 %v2352_v39 }
 0x1af   :  { %v3046_v63 = vpop.permute.xlu0 %1865 }
 0x1b0   :  { %v3048_v26 = vpop.permute.xlu1 %1355 }
 0x1b3   :  { %1526 = vmatmul.mubr.bf16.gmra.mrb[72].mxu0 %v2354_v40  ;;  %v3050_v31 = vpop.permute.xlu0 %1870 }
 0x1b4   :  { %1639 = vmatmul.mubr.bf16.gmra.mrb[72].mxu1 %v2354_v40  ;;  %1535 = vmatprep.mubr.bf16.mxu0 %v2355_v41 }
 0x1b5   :  { %1648 = vmatprep.mubr.bf16.mxu1 %v2355_v41 }
 0x1bb   :  { %1536 = vmatmul.mubr.bf16.gmra.mrb[76].mxu0 %v2357_v42 }
 0x1bc   :  { %1649 = vmatmul.mubr.bf16.gmra.mrb[76].mxu1 %v2357_v42  ;;  %1545 = vmatprep.mubr.bf16.mxu0 %v2358_v43 }
 0x1bd   :  { %1658 = vmatprep.mubr.bf16.mxu1 %v2358_v43 }
 0x1c3   :  { %1546 = vmatmul.mubr.bf16.gmra.mrb[80].mxu0 %v2360_v44 }
 0x1c4   :  { %1659 = vmatmul.mubr.bf16.gmra.mrb[80].mxu1 %v2360_v44  ;;  %1555 = vmatprep.mubr.bf16.mxu0 %v2361_v45 }
 0x1c5   :  { %1668 = vmatprep.mubr.bf16.mxu1 %v2361_v45 }
 0x1cb   :  { %1556 = vmatmul.mubr.bf16.gmra.mrb[84].mxu0 %v2363_v46 }
 0x1cc   :  { %1669 = vmatmul.mubr.bf16.gmra.mrb[84].mxu1 %v2363_v46  ;;  %1565 = vmatprep.mubr.bf16.mxu0 %v2364_v47 }
 0x1cd   :  { %1678 = vmatprep.mubr.bf16.mxu1 %v2364_v47 }
 0x1d3   :  { %1566 = vmatmul.mubr.bf16.gmra.mrb[88].mxu0 %v2366_v48 }
 0x1d4   :  { %1679 = vmatmul.mubr.bf16.gmra.mrb[88].mxu1 %v2366_v48  ;;  %1575 = vmatprep.mubr.bf16.mxu0 %v2367_v49 }
 0x1d5   :  { %1688 = vmatprep.mubr.bf16.mxu1 %v2367_v49 }
 0x1db   :  { %1576 = vmatmul.mubr.bf16.gmra.mrb[92].mxu0 %v2369_v50 }
 0x1dc   :  { %1689 = vmatmul.mubr.bf16.gmra.mrb[92].mxu1 %v2369_v50 }
 0x276   :  { %v1507_v0 = vpop.f32.mrb[64].mxu0 }
 0x277   :  { %v1508_v1 = vadd.f32 %v1507_v0, %v1316_v51  ;;  %v1620_v2 = vpop.f32.mrb[64].mxu1  ;;  %v1509_v3 = vpop.f32.mrb[65].mxu0 }
 0x278   :  { %v1621_v4 = vadd.f32 %v1620_v2, %v1316_v51  ;;  %v1510_v5 = vadd.f32 %v1509_v3, %v1316_v51  ;;  %v1622_v6 = vpop.f32.mrb[65].mxu1  ;;  %v1511_v7 = vpop.f32.mrb[66].mxu0 }
 0x279   :  { %v1699_v8 = vmul.f32 0.2, %v1508_v1  ;;  %v1623_v9 = vadd.f32 %v1622_v6, %v1316_v51  ;;  %v1512_v10 = vadd.f32 %v1511_v7, %v1321_v52  ;;  %v1624_v11 = vpop.f32.mrb[66].mxu1  ;;  %v1513_v12 = vpop.f32.mrb[67].mxu0 }
 0x27a   :  { %v1701_v13 = vmul.f32 0.2, %v1621_v4  ;;  %v1700_v14 = vmul.f32 0.2, %v1510_v5  ;;  %v1625_v15 = vadd.f32 %v1624_v11, %v1321_v52  ;;  %v1514_v17 = vadd.f32 %v1513_v12, %v1321_v52  ;;  %v1626_v18 = vpop.f32.mrb[67].mxu1 }
 0x27b   :  { %v1763_v19 = vmax.f32 %v1508_v1, %v1699_v8  ;;  %v1702_v20 = vmul.f32 0.2, %v1623_v9  ;;  %v1703_v21 = vmul.f32 0.2, %v1512_v10  ;;  %v1627_v22 = vadd.f32 %v1626_v18, %v1321_v52  ;;  %v3063_v18 = vpop.permute.xlu0 %1875 }
 0x27c   :  { %v1765_v16 = vmax.f32 %v1621_v4, %v1701_v13  ;;  %v1764_v23 = vmax.f32 %v1510_v5, %v1700_v14  ;;  %v1705_v24 = vmul.f32 0.2, %v1625_v15  ;;  %v1704_v25 = vmul.f32 0.2, %v1514_v17  ;;  %v3059_v13 = vpop.permute.xlu1 %1360 }
 0x27d   :  { %v1923_v27 = vmul.f32 %v1846_v56, %v1763_v19  ;;  %v1766_v28 = vmax.f32 %v1623_v9, %v1702_v20  ;;  %v1767_v29 = vmax.f32 %v1512_v10, %v1703_v21  ;;  %v1706_v30 = vmul.f32 0.2, %v1627_v22 }
 0x27e   :  { %v1925_v32 = vmul.f32 %v1846_v56, %v1765_v16  ;;  %v1924_v33 = vmul.f32 %v1846_v56, %v1764_v23  ;;  %v1769_v34 = vmax.f32 %v1625_v15, %v1705_v24  ;;  %v1768_v35 = vmax.f32 %v1514_v17, %v1704_v25  ;;  %v1517_v36 = vpop.f32.mrb[68].mxu0 }
 0x27f   :  { %v1926_v37 = vmul.f32 %v1846_v56, %v1766_v28  ;;  %v1927_v38 = vmul.f32 %v1851_v57, %v1767_v29  ;;  %v1770_v39 = vmax.f32 %v1627_v22, %v1706_v30  ;;  %v1518_v40 = vadd.f32 %v1517_v36, %v3030_v53  ;;  %v1630_v41 = vpop.f32.mrb[68].mxu1  ;;  %v1519_v42 = vpop.f32.mrb[69].mxu0 }
 0x280   :  { %v1929_v43 = vmul.f32 %v1851_v57, %v1769_v34  ;;  %v1928_v44 = vmul.f32 %v1851_v57, %v1768_v35  ;;  %v1631_v45 = vadd.f32 %v1630_v41, %v3030_v53  ;;  %v1520_v46 = vadd.f32 %v1519_v42, %v3030_v53  ;;  %v1632_v47 = vpop.f32.mrb[69].mxu1  ;;  %v1521_v48 = vpop.f32.mrb[70].mxu0 }
 0x281   :  { %v1987_v49 = vadd.f32 %v1927_v38, %v1923_v27  ;;  %v1930_v50 = vmul.f32 %v1851_v57, %v1770_v39  ;;  %v1707_v51 = vmul.f32 0.2, %v1518_v40  ;;  %v1633_v52 = vadd.f32 %v1632_v47, %v3030_v53  ;;  %v1634_v56 = vpop.f32.mrb[70].mxu1  ;;  %v1523_v0 = vpop.f32.mrb[71].mxu0 }
 0x282   :  { %v2029_v1 = vadd.f32 %v1929_v43, %v1925_v32  ;;  %v2008_v2 = vadd.f32 %v1928_v44, %v1924_v33  ;;  %v1709_v3 = vmul.f32 0.2, %v1631_v45  ;;  %v1708_v4 = vmul.f32 0.2, %v1520_v46  ;;  %v1636_v5 = vpop.f32.mrb[71].mxu1 }
 0x283   :  { %v2050_v6 = vadd.f32 %v1930_v50, %v1926_v37  ;;  %v1771_v7 = vmax.f32 %v1518_v40, %v1707_v51  ;;  %v1710_v8 = vmul.f32 0.2, %v1633_v52  ;;  %v1522_v9 = vadd.f32 %v1521_v48, %v3032_v54 }
 0x284   :  { %v1773_v10 = vmax.f32 %v1631_v45, %v1709_v3  ;;  %v1772_v11 = vmax.f32 %v1520_v46, %v1708_v4  ;;  %v1635_v12 = vadd.f32 %v1634_v56, %v3032_v54  ;;  %v1524_v57 = vadd.f32 %v1523_v0, %v3032_v54  ;;  %v3076_v0 = vpop.permute.xlu1 %1365 }
 0x285   :  { %v1931_v53 = vmul.f32 %v3038_v59, %v1771_v7  ;;  %v1774_v14 = vmax.f32 %v1633_v52, %v1710_v8  ;;  %v1711_v15 = vmul.f32 0.2, %v1522_v9  ;;  %v1637_v17 = vadd.f32 %v1636_v5, %v3032_v54  ;;  %v3079_v5 = vpop.permute.xlu0 %1880 }
 0x286   :  { %v1933_v19 = vmul.f32 %v3038_v59, %v1773_v10  ;;  %v1932_v20 = vmul.f32 %v3038_v59, %v1772_v11  ;;  %v1713_v21 = vmul.f32 0.2, %v1635_v12  ;;  %v1712_v22 = vmul.f32 0.2, %v1524_v57  ;;  %v1527_v16 = vpop.f32.mrb[72].mxu0 }
 0x287   :  { %v1988_v23 = vadd.f32 %v1987_v49, %v1931_v53  ;;  %v1934_v24 = vmul.f32 %v3038_v59, %v1774_v14  ;;  %v1775_v25 = vmax.f32 %v1522_v9, %v1711_v15  ;;  %v1714_v27 = vmul.f32 0.2, %v1637_v17  ;;  %v1640_v28 = vpop.f32.mrb[72].mxu1  ;;  %v1529_v29 = vpop.f32.mrb[73].mxu0 }
 0x288   :  { %v2030_v30 = vadd.f32 %v2029_v1, %v1933_v19  ;;  %v2009_v32 = vadd.f32 %v2008_v2, %v1932_v20  ;;  %v1777_v33 = vmax.f32 %v1635_v12, %v1713_v21  ;;  %v1776_v54 = vmax.f32 %v1524_v57, %v1712_v22  ;;  %v1642_v34 = vpop.f32.mrb[73].mxu1  ;;  %v1531_v35 = vpop.f32.mrb[74].mxu0 }
 0x289   :  { %v2051_v36 = vadd.f32 %v2050_v6, %v1934_v24  ;;  %v1935_v37 = vmul.f32 %v3042_v61, %v1775_v25  ;;  %v1778_v38 = vmax.f32 %v1637_v17, %v1714_v27  ;;  %v1528_v39 = vadd.f32 %v1527_v16, %v3034_v55  ;;  %v1644_v40 = vpop.f32.mrb[74].mxu1  ;;  %v1533_v41 = vpop.f32.mrb[75].mxu0 }
 0x28a   :  { %v1937_v59 = vmul.f32 %v3042_v61, %v1777_v33  ;;  %v1936_v42 = vmul.f32 %v3042_v61, %v1776_v54  ;;  %v1641_v43 = vadd.f32 %v1640_v28, %v3034_v55  ;;  %v1530_v44 = vadd.f32 %v1529_v29, %v3034_v55  ;;  %v1646_v45 = vpop.f32.mrb[75].mxu1 }
 0x28b   :  { %v1989_v46 = vadd.f32 %v1988_v23, %v1935_v37  ;;  %v1938_v47 = vmul.f32 %v3042_v61, %v1778_v38  ;;  %v1715_v48 = vmul.f32 0.2, %v1528_v39  ;;  %v1643_v49 = vadd.f32 %v1642_v34, %v3034_v55 }
 0x28c   :  { %v2031_v50 = vadd.f32 %v2030_v30, %v1937_v59  ;;  %v2010_v51 = vadd.f32 %v2009_v32, %v1936_v42  ;;  %v1717_v52 = vmul.f32 0.2, %v1641_v43  ;;  %v1716_v56 = vmul.f32 0.2, %v1530_v44 }
 0x28d   :  { %v2052_v1 = vadd.f32 %v2051_v36, %v1938_v47  ;;  %v1779_v2 = vmax.f32 %v1528_v39, %v1715_v48  ;;  %v1718_v3 = vmul.f32 0.2, %v1643_v49  ;;  %v1532_v4 = vadd.f32 %v1531_v35, %v3036_v58  ;;  %v3094_v39 = vpop.permute.xlu1 %1370 }
 0x28e   :  { %v1781_v6 = vmax.f32 %v1641_v43, %v1717_v52  ;;  %v1780_v7 = vmax.f32 %v1530_v44, %v1716_v56  ;;  %v1645_v61 = vadd.f32 %v1644_v40, %v3036_v58  ;;  %v1534_v8 = vadd.f32 %v1533_v41, %v3036_v58  ;;  %v1537_v55 = vpop.f32.mrb[76].mxu0  ;;  %v3098_v43 = vpop.permute.xlu0 %1885 }
 0x28f   :  { %v1939_v9 = vmul.f32 %v3046_v63, %v1779_v2  ;;  %v1782_v10 = vmax.f32 %v1643_v49, %v1718_v3  ;;  %v1719_v11 = vmul.f32 0.2, %v1532_v4  ;;  %v1647_v12 = vadd.f32 %v1646_v45, %v3036_v58  ;;  %v1650_v57 = vpop.f32.mrb[76].mxu1  ;;  %v1539_v53 = vpop.f32.mrb[77].mxu0 }
 0x290   :  { %v1941_v14 = vmul.f32 %v3046_v63, %v1781_v6  ;;  %v1940_v15 = vmul.f32 %v3046_v63, %v1780_v7  ;;  %v1721_v17 = vmul.f32 0.2, %v1645_v61  ;;  %v1720_v19 = vmul.f32 0.2, %v1534_v8  ;;  %v1652_v20 = vpop.f32.mrb[77].mxu1  ;;  %v1541_v21 = vpop.f32.mrb[78].mxu0 }
 0x291   :  { %v1990_v22 = vadd.f32 %v1989_v46, %v1939_v9  ;;  %v1942_v16 = vmul.f32 %v3046_v63, %v1782_v10  ;;  %v1783_v23 = vmax.f32 %v1532_v4, %v1719_v11  ;;  %v1722_v24 = vmul.f32 0.2, %v1647_v12  ;;  %v1654_v25 = vpop.f32.mrb[78].mxu1  ;;  %v1543_v27 = vpop.f32.mrb[79].mxu0 }
 0x292   :  { %v2032_v28 = vadd.f32 %v2031_v50, %v1941_v14  ;;  %v2011_v29 = vadd.f32 %v2010_v51, %v1940_v15  ;;  %v1785_v58 = vmax.f32 %v1645_v61, %v1721_v17  ;;  %v1784_v30 = vmax.f32 %v1534_v8, %v1720_v19  ;;  %v1656_v32 = vpop.f32.mrb[79].mxu1 }
 0x293   :  { %v2053_v33 = vadd.f32 %v2052_v1, %v1942_v16  ;;  %v1943_v54 = vmul.f32 %v3050_v31, %v1783_v23  ;;  %v1786_v34 = vmax.f32 %v1647_v12, %v1722_v24  ;;  %v1538_v35 = vadd.f32 %v1537_v55, %v3040_v60  ;;  %v3108_v24 = vpop.permute.xlu1 %1375 }
 0x294   :  { %v1945_v36 = vmul.f32 %v3050_v31, %v1785_v58  ;;  %v1944_v37 = vmul.f32 %v3050_v31, %v1784_v30  ;;  %v1651_v63 = vadd.f32 %v1650_v57, %v3040_v60  ;;  %v1540_v38 = vadd.f32 %v1539_v53, %v3040_v60 }
 0x295   :  { %v1991_v40 = vadd.f32 %v1990_v22, %v1943_v54  ;;  %v1946_v41 = vmul.f32 %v3050_v31, %v1786_v34  ;;  %v1723_v59 = vmul.f32 0.2, %v1538_v35  ;;  %v1653_v42 = vadd.f32 %v1652_v20, %v3040_v60 }
 0x296   :  { %v2033_v44 = vadd.f32 %v2032_v28, %v1945_v36  ;;  %v2012_v45 = vadd.f32 %v2011_v29, %v1944_v37  ;;  %v1725_v46 = vmul.f32 0.2, %v1651_v63  ;;  %v1724_v47 = vmul.f32 0.2, %v1540_v38  ;;  %v1547_v48 = vpop.f32.mrb[80].mxu0  ;;  %v1891_v29 = vpop.permute.xlu0 %1890 }
 0x297   :  { %v2054_v49 = vadd.f32 %v2053_v33, %v1946_v41  ;;  %v1787_v50 = vmax.f32 %v1538_v35, %v1723_v59  ;;  %v1726_v51 = vmul.f32 0.2, %v1653_v42  ;;  %v1542_v52 = vadd.f32 %v1541_v21, %v3044_v62  ;;  %v1660_v56 = vpop.f32.mrb[80].mxu1  ;;  %v1549_v1 = vpop.f32.mrb[81].mxu0 }
 0x298   :  { %v1789_v2 = vmax.f32 %v1651_v63, %v1725_v46  ;;  %v1788_v3 = vmax.f32 %v1540_v38, %v1724_v47  ;;  %v1655_v31 = vadd.f32 %v1654_v25, %v3044_v62  ;;  %v1544_v60 = vadd.f32 %v1543_v27, %v3044_v62  ;;  %v1662_v4 = vpop.f32.mrb[81].mxu1  ;;  %v1551_v6 = vpop.f32.mrb[82].mxu0 }
 0x299   :  { %v1947_v7 = vmul.f32 %v3063_v18, %v1787_v50  ;;  %v1790_v61 = vmax.f32 %v1653_v42, %v1726_v51  ;;  %v1727_v8 = vmul.f32 0.2, %v1542_v52  ;;  %v1657_v55 = vadd.f32 %v1656_v32, %v3044_v62  ;;  %v1664_v9 = vpop.f32.mrb[82].mxu1  ;;  %v1553_v10 = vpop.f32.mrb[83].mxu0 }
 0x29a   :  { %v1949_v11 = vmul.f32 %v3063_v18, %v1789_v2  ;;  %v1948_v12 = vmul.f32 %v3063_v18, %v1788_v3  ;;  %v1729_v57 = vmul.f32 0.2, %v1655_v31  ;;  %v1728_v53 = vmul.f32 0.2, %v1544_v60  ;;  %v1666_v14 = vpop.f32.mrb[83].mxu1 }
 0x29b   :  { %v1992_v15 = vadd.f32 %v1991_v40, %v1947_v7  ;;  %v1950_v17 = vmul.f32 %v3063_v18, %v1790_v61  ;;  %v1791_v19 = vmax.f32 %v1542_v52, %v1727_v8  ;;  %v1730_v20 = vmul.f32 0.2, %v1657_v55  ;;  %v3125_v61 = vpop.permute.xlu1 %1380 }
 0x29c   :  { %v2034_v21 = vadd.f32 %v2033_v44, %v1949_v11  ;;  %v2013_v22 = vadd.f32 %v2012_v45, %v1948_v12  ;;  %v1793_v16 = vmax.f32 %v1655_v31, %v1729_v57  ;;  %v1792_v23 = vmax.f32 %v1544_v60, %v1728_v53  ;;  %v1896_v11 = vpop.permute.xlu0 %1895 }
 0x29d   :  { %v2055_v62 = vadd.f32 %v2054_v49, %v1950_v17  ;;  %v1951_v25 = vmul.f32 %v3079_v5, %v1791_v19  ;;  %v1794_v27 = vmax.f32 %v1657_v55, %v1730_v20  ;;  %v1548_v28 = vadd.f32 %v1547_v48, %v3048_v26 }
 0x29e   :  { %v1953_v58 = vmul.f32 %v3079_v5, %v1793_v16  ;;  %v1952_v30 = vmul.f32 %v3079_v5, %v1792_v23  ;;  %v1661_v18 = vadd.f32 %v1660_v56, %v3048_v26  ;;  %v1550_v32 = vadd.f32 %v1549_v1, %v3048_v26  ;;  %v1557_v33 = vpop.f32.mrb[84].mxu0 }
 0x29f   :  { %v1993_v54 = vadd.f32 %v1992_v15, %v1951_v25  ;;  %v1954_v34 = vmul.f32 %v3079_v5, %v1794_v27  ;;  %v1731_v35 = vmul.f32 0.2, %v1548_v28  ;;  %v1663_v36 = vadd.f32 %v1662_v4, %v3048_v26  ;;  %v1670_v37 = vpop.f32.mrb[84].mxu1  ;;  %v1559_v63 = vpop.f32.mrb[85].mxu0 }
 0x2a0   :  { %v2035_v38 = vadd.f32 %v2034_v21, %v1953_v58  ;;  %v2014_v40 = vadd.f32 %v2013_v22, %v1952_v30  ;;  %v1733_v41 = vmul.f32 0.2, %v1661_v18  ;;  %v1732_v59 = vmul.f32 0.2, %v1550_v32  ;;  %v1672_v42 = vpop.f32.mrb[85].mxu1  ;;  %v1561_v44 = vpop.f32.mrb[86].mxu0 }
 0x2a1   :  { %v2056_v45 = vadd.f32 %v2055_v62, %v1954_v34  ;;  %v1795_v46 = vmax.f32 %v1548_v28, %v1731_v35  ;;  %v1734_v47 = vmul.f32 0.2, %v1663_v36  ;;  %v1552_v48 = vadd.f32 %v1551_v6, %v3059_v13  ;;  %v1674_v49 = vpop.f32.mrb[86].mxu1  ;;  %v1563_v50 = vpop.f32.mrb[87].mxu0 }
 0x2a2   :  { %v1797_v51 = vmax.f32 %v1661_v18, %v1733_v41  ;;  %v1796_v5 = vmax.f32 %v1550_v32, %v1732_v59  ;;  %v1665_v52 = vadd.f32 %v1664_v9, %v3059_v13  ;;  %v1554_v26 = vadd.f32 %v1553_v10, %v3059_v13  ;;  %v1676_v56 = vpop.f32.mrb[87].mxu1 }
 0x2a3   :  { %v1955_v1 = vmul.f32 %v3098_v43, %v1795_v46  ;;  %v1798_v2 = vmax.f32 %v1663_v36, %v1734_v47  ;;  %v1735_v3 = vmul.f32 0.2, %v1552_v48  ;;  %v1667_v31 = vadd.f32 %v1666_v14, %v3059_v13 }
 0x2a4   :  { %v1957_v60 = vmul.f32 %v3098_v43, %v1797_v51  ;;  %v1956_v4 = vmul.f32 %v3098_v43, %v1796_v5  ;;  %v1737_v6 = vmul.f32 0.2, %v1665_v52  ;;  %v1736_v7 = vmul.f32 0.2, %v1554_v26  ;;  %v1901_v5 = vpop.permute.xlu0 %1900 }
 0x2a5   :  { %v1994_v8 = vadd.f32 %v1993_v54, %v1955_v1  ;;  %v1958_v55 = vmul.f32 %v3098_v43, %v1798_v2  ;;  %v1799_v9 = vmax.f32 %v1552_v48, %v1735_v3  ;;  %v1738_v10 = vmul.f32 0.2, %v1667_v31 }
 0x2a6   :  { %v2036_v12 = vadd.f32 %v2035_v38, %v1957_v60  ;;  %v2015_v57 = vadd.f32 %v2014_v40, %v1956_v4  ;;  %v1801_v53 = vmax.f32 %v1665_v52, %v1737_v6  ;;  %v1800_v15 = vmax.f32 %v1554_v26, %v1736_v7  ;;  %v1567_v17 = vpop.f32.mrb[88].mxu0 }
 0x2a7   :  { %v2057_v13 = vadd.f32 %v2056_v45, %v1958_v55  ;;  %v1959_v14 = vmul.f32 %v1891_v29, %v1799_v9  ;;  %v1802_v19 = vmax.f32 %v1667_v31, %v1738_v10  ;;  %v1558_v20 = vadd.f32 %v1557_v33, %v3076_v0  ;;  %v1680_v21 = vpop.f32.mrb[88].mxu1  ;;  %v1569_v22 = vpop.f32.mrb[89].mxu0 }
 0x2a8   :  { %v1961_v16 = vmul.f32 %v1891_v29, %v1801_v53  ;;  %v1960_v23 = vmul.f32 %v1891_v29, %v1800_v15  ;;  %v1671_v62 = vadd.f32 %v1670_v37, %v3076_v0  ;;  %v1560_v43 = vadd.f32 %v1559_v63, %v3076_v0  ;;  %v1682_v25 = vpop.f32.mrb[89].mxu1  ;;  %v3131_v27 = vpop.f32.mrb[90].mxu0 }
 0x2a9   :  { %v1995_v28 = vadd.f32 %v1994_v8, %v1959_v14  ;;  %v1962_v58 = vmul.f32 %v1891_v29, %v1802_v19  ;;  %v1739_v30 = vmul.f32 0.2, %v1558_v20  ;;  %v1673_v18 = vadd.f32 %v1672_v42, %v3076_v0  ;;  %v3134_v32 = vpop.f32.mrb[90].mxu1  ;;  %v3136_v54 = vpop.f32.mrb[91].mxu0 }
 0x2aa   :  { %v2037_v33 = vadd.f32 %v2036_v12, %v1961_v16  ;;  %v2016_v34 = vadd.f32 %v2015_v57, %v1960_v23  ;;  %v1741_v35 = vmul.f32 0.2, %v1671_v62  ;;  %v1740_v36 = vmul.f32 0.2, %v1560_v43  ;;  %v3138_v38 = vpop.f32.mrb[91].mxu1  ;;  %v3143_v42 = vpop.permute.xlu1 %1385 }
 0x2ab   :  { %v2058_v37 = vadd.f32 %v2057_v13, %v1962_v58  ;;  %v1803_v63 = vmax.f32 %v1558_v20, %v1739_v30  ;;  %v1742_v40 = vmul.f32 0.2, %v1673_v18  ;;  %v1562_v41 = vadd.f32 %v1561_v44, %v3094_v39 }
 0x2ac   :  { %v1805_v59 = vmax.f32 %v1671_v62, %v1741_v35  ;;  %v1804_v29 = vmax.f32 %v1560_v43, %v1740_v36  ;;  %v1675_v45 = vadd.f32 %v1674_v49, %v3094_v39  ;;  %v1564_v0 = vadd.f32 %v1563_v50, %v3094_v39  ;;  %v1906_v36 = vpop.permute.xlu0 %1905 }
 0x2ad   :  { %v1963_v46 = vmul.f32 %v1896_v11, %v1803_v63  ;;  %v1806_v47 = vmax.f32 %v1673_v18, %v1742_v40  ;;  %v1743_v48 = vmul.f32 0.2, %v1562_v41  ;;  %v1677_v51 = vadd.f32 %v1676_v56, %v3094_v39 }
 0x2ae   :  { %v1965_v52 = vmul.f32 %v1896_v11, %v1805_v59  ;;  %v1964_v26 = vmul.f32 %v1896_v11, %v1804_v29  ;;  %v1745_v1 = vmul.f32 0.2, %v1675_v45  ;;  %v1744_v2 = vmul.f32 0.2, %v1564_v0  ;;  %v1577_v3 = vpop.f32.mrb[92].mxu0 }
 0x2af   :  { %v1996_v44 = vadd.f32 %v1995_v28, %v1963_v46  ;;  %v1966_v31 = vmul.f32 %v1896_v11, %v1806_v47  ;;  %v1807_v60 = vmax.f32 %v1562_v41, %v1743_v48  ;;  %v1746_v4 = vmul.f32 0.2, %v1677_v51  ;;  %v1690_v49 = vpop.f32.mrb[92].mxu1  ;;  %v1579_v6 = vpop.f32.mrb[93].mxu0 }
 0x2b0   :  { %v2038_v50 = vadd.f32 %v2037_v33, %v1965_v52  ;;  %v2017_v7 = vadd.f32 %v2016_v34, %v1964_v26  ;;  %v1809_v8 = vmax.f32 %v1675_v45, %v1745_v1  ;;  %v1808_v55 = vmax.f32 %v1564_v0, %v1744_v2  ;;  %v1692_v9 = vpop.f32.mrb[93].mxu1  ;;  %v3146_v10 = vpop.f32.mrb[94].mxu0 }
 0x2b1   :  { %v2059_v39 = vadd.f32 %v2058_v37, %v1966_v31  ;;  %v1967_v56 = vmul.f32 %v1901_v5, %v1807_v60  ;;  %v1810_v12 = vmax.f32 %v1677_v51, %v1746_v4  ;;  %v1568_v57 = vadd.f32 %v1567_v17, %v3108_v24  ;;  %v3149_v53 = vpop.f32.mrb[94].mxu1  ;;  %v3151_v15 = vpop.f32.mrb[95].mxu0 }
 0x2b2   :  { %v1969_v11 = vmul.f32 %v1901_v5, %v1809_v8  ;;  %v1968_v13 = vmul.f32 %v1901_v5, %v1808_v55  ;;  %v1681_v14 = vadd.f32 %v1680_v21, %v3108_v24  ;;  %v1570_v19 = vadd.f32 %v1569_v22, %v3108_v24  ;;  %v3155_v20 = vpop.f32.mrb[95].mxu1  ;;  %v1391_v28 = vpop.permute.xlu1 %1390 }
 0x2b3   :  { %v1997_v16 = vadd.f32 %v1996_v44, %v1967_v56  ;;  %v1970_v23 = vmul.f32 %v1901_v5, %v1810_v12  ;;  %v1747_v62 = vmul.f32 0.2, %v1568_v57  ;;  %v1683_v43 = vadd.f32 %v1682_v25, %v3108_v24 }
 0x2b4   :  { %v2039_v58 = vadd.f32 %v2038_v50, %v1969_v11  ;;  %v2018_v17 = vadd.f32 %v2017_v7, %v1968_v13  ;;  %v1749_v30 = vmul.f32 0.2, %v1681_v14  ;;  %v1748_v18 = vmul.f32 0.2, %v1570_v19 }
 0x2b5   :  { %v2060_v33 = vadd.f32 %v2059_v39, %v1970_v23  ;;  %v1811_v34 = vmax.f32 %v1568_v57, %v1747_v62  ;;  %v1750_v35 = vmul.f32 0.2, %v1683_v43  ;;  %v1572_v21 = vadd.f32 %v3131_v27, %v3125_v61 }
 0x2b6   :  { %v1813_v22 = vmax.f32 %v1681_v14, %v1749_v30  ;;  %v1812_v37 = vmax.f32 %v1570_v19, %v1748_v18  ;;  %v1685_v63 = vadd.f32 %v3134_v32, %v3125_v61  ;;  %v1574_v24 = vadd.f32 %v3136_v54, %v3125_v61  ;;  %v1911_v5 = vpop.permute.xlu1 %1910  ;;  %v1916_v19 = vpop.permute.xlu0 %1915 }
 0x2b7   :  { %v1971_v25 = vmul.f32 %v1906_v36, %v1811_v34  ;;  %v1814_v40 = vmax.f32 %v1683_v43, %v1750_v35  ;;  %v1751_v41 = vmul.f32 0.2, %v1572_v21  ;;  %v1687_v59 = vadd.f32 %v3138_v38, %v3125_v61 }
 0x2b8   :  { %v1973_v29 = vmul.f32 %v1906_v36, %v1813_v22  ;;  %v1972_v45 = vmul.f32 %v1906_v36, %v1812_v37  ;;  %v1753_v0 = vmul.f32 0.2, %v1685_v63  ;;  %v1752_v46 = vmul.f32 0.2, %v1574_v24 }
 0x2b9   :  { %v1998_v27 = vadd.f32 %v1997_v16, %v1971_v25  ;;  %v1974_v47 = vmul.f32 %v1906_v36, %v1814_v40  ;;  %v1815_v48 = vmax.f32 %v1572_v21, %v1751_v41  ;;  %v1754_v51 = vmul.f32 0.2, %v1687_v59 }
 0x2ba   :  { %v2040_v52 = vadd.f32 %v2039_v58, %v1973_v29  ;;  %v2019_v32 = vadd.f32 %v2018_v17, %v1972_v45  ;;  %v1817_v26 = vmax.f32 %v1685_v63, %v1753_v0  ;;  %v1816_v1 = vmax.f32 %v1574_v24, %v1752_v46  ;;  %v1921_v21 = vpop.permute.xlu1 %1920 }
 0x2bb   :  { %v2061_v54 = vadd.f32 %v2060_v33, %v1974_v47  ;;  %v1975_v2 = vmul.f32 %v1911_v5, %v1815_v48  ;;  %v1818_v44 = vmax.f32 %v1687_v59, %v1754_v51  ;;  %v1578_v31 = vadd.f32 %v1577_v3, %v3143_v42 }
 0x2bc   :  { %v1977_v60 = vmul.f32 %v1911_v5, %v1817_v26  ;;  %v1976_v61 = vmul.f32 %v1911_v5, %v1816_v1  ;;  %v1691_v38 = vadd.f32 %v1690_v49, %v3143_v42  ;;  %v1580_v4 = vadd.f32 %v1579_v6, %v3143_v42 }
 0x2bd   :  { %v1999_v50 = vadd.f32 %v1998_v27, %v1975_v2  ;;  %v1978_v7 = vmul.f32 %v1911_v5, %v1818_v44  ;;  %v1755_v8 = vmul.f32 0.2, %v1578_v31  ;;  %v1693_v55 = vadd.f32 %v1692_v9, %v3143_v42 }
 0x2be   :  { %v2041_v39 = vadd.f32 %v2040_v52, %v1977_v60  ;;  %v2020_v56 = vadd.f32 %v2019_v32, %v1976_v61  ;;  %v1757_v12 = vmul.f32 0.2, %v1691_v38  ;;  %v1756_v57 = vmul.f32 0.2, %v1580_v4  ;;  %v2075_v60 = vpop.permute.xlu0 %2074 }
 0x2bf   :  { %v2062_v11 = vadd.f32 %v2061_v54, %v1978_v7  ;;  %v1819_v13 = vmax.f32 %v1578_v31, %v1755_v8  ;;  %v1758_v14 = vmul.f32 0.2, %v1693_v55  ;;  %v1582_v3 = vadd.f32 %v3146_v10, %v1391_v28 }
 0x2c0   :  { %v1821_v16 = vmax.f32 %v1691_v38, %v1757_v12  ;;  %v1820_v23 = vmax.f32 %v1580_v4, %v1756_v57  ;;  %v1695_v49 = vadd.f32 %v3149_v53, %v1391_v28  ;;  %v1584_v6 = vadd.f32 %v3151_v15, %v1391_v28 }
 0x2c1   :  { %v1979_v62 = vmul.f32 %v1916_v19, %v1819_v13  ;;  %v1822_v43 = vmax.f32 %v1693_v55, %v1758_v14  ;;  %v1759_v58 = vmul.f32 0.2, %v1582_v3  ;;  %v1697_v42 = vadd.f32 %v3155_v20, %v1391_v28 }
 0x2c2   :  { %v1981_v9 = vmul.f32 %v1916_v19, %v1821_v16  ;;  %v1980_v17 = vmul.f32 %v1916_v19, %v1820_v23  ;;  %v1761_v30 = vmul.f32 0.2, %v1695_v49  ;;  %v1760_v18 = vmul.f32 0.2, %v1584_v6 }
 0x2c3   :  { %v2000_v33 = vadd.f32 %v1999_v50, %v1979_v62  ;;  %v1982_v34 = vmul.f32 %v1916_v19, %v1822_v43  ;;  %v1823_v35 = vmax.f32 %v1582_v3, %v1759_v58  ;;  %v1762_v10 = vmul.f32 0.2, %v1697_v42 }
 0x2c4   :  { %v2042_v36 = vadd.f32 %v2041_v39, %v1981_v9  ;;  %v2021_v22 = vadd.f32 %v2020_v56, %v1980_v17  ;;  %v1825_v37 = vmax.f32 %v1695_v49, %v1761_v30  ;;  %v1824_v53 = vmax.f32 %v1584_v6, %v1760_v18 }
 0x2c5   :  { %v2063_v63 = vadd.f32 %v2062_v11, %v1982_v34  ;;  %v1983_v15 = vmul.f32 %v1921_v21, %v1823_v35  ;;  %v1826_v24 = vmax.f32 %v1697_v42, %v1762_v10  ;;  %v2077_v41 = vlaneseq }
 0x2c6   :  { %v1985_v25 = vmul.f32 %v1921_v21, %v1825_v37  ;;  %v1984_v40 = vmul.f32 %v1921_v21, %v1824_v53  ;;  %v2403_v62 = vmov 1966171168  }
 0x2c7   :  { %v2001_v20 = vadd.f32 %v2000_v33, %v1983_v15  ;;  %v1986_v28 = vmul.f32 %v1921_v21, %v1826_v24  ;;  %v2078_v47 = vshrl.u32 %v2077_v41, 7  ;;  %v2108_v43 = vunpack.c.l.s4 %v2403_v62 }
 0x2c8   :  { %v2043_v59 = vadd.f32 %v2042_v36, %v1985_v25  ;;  %v2022_v29 = vadd.f32 %v2021_v22, %v1984_v40  ;;  %vm2132_vm1 = vcmp.lt.s32.totalorder %v2077_v41, 512 }
 0x2c9   :  { %v2002_v45 = vrot.slane %v2001_v20, 4  ;;  %v2064_v0 = vadd.f32 %v2063_v63, %v1986_v28  ;;  %v2079_v2 = vsub.s32 0, %v2078_v47  ;;  %v2109_v42 = vunpack.c.0.s8 %v2108_v43 }
 0x2ca   :  { %v2044_v46 = vrot.slane %v2043_v59, 4  ;;  %v2023_v27 = vrot.slane %v2022_v29, 4 }
 0x2cb   :  { %v2003_v48 = vadd.f32 %v2002_v45, %v2001_v20  ;;  %v2065_v51 = vrot.slane %v2064_v0, 4  ;;  %v2080_v55 = vrot.slane %v2075_v60, %v2079_v2  ;;  %v2112_v10 = vsub.s32 %v2109_v42, %v2078_v47 }
 0x2cc   :  { %v2045_v5 = vadd.f32 %v2044_v46, %v2043_v59  ;;  %v2024_v52 = vadd.f32 %v2023_v27, %v2022_v29 }
 0x2cd   :  { %v2004_v32 = vrot.slane %v2003_v48, 2  ;;  %v2066_v26 = vadd.f32 %v2065_v51, %v2064_v0 }
 0x2ce   :  { %v2046_v1 = vrot.slane %v2045_v5, 2  ;;  %v2025_v54 = vrot.slane %v2024_v52, 2 }
 0x2cf   :  { %v2005_v44 = vadd.f32 %v2004_v32, %v2003_v48  ;;  %v2067_v31 = vrot.slane %v2066_v26, 2 }
 0x2d0   :  { %v2047_v61 = vadd.f32 %v2046_v1, %v2045_v5  ;;  %v2026_v38 = vadd.f32 %v2025_v54, %v2024_v52 }
 0x2d1   :  { %v2006_v4 = vrot.slane %v2005_v44, 1  ;;  %v2068_v50 = vadd.f32 %v2067_v31, %v2066_v26 }
 0x2d2   :  { %v2048_v7 = vrot.slane %v2047_v61, 1  ;;  %v2027_v8 = vrot.slane %v2026_v38, 1 }
 0x2d3   :  { %v2007_v39 = vadd.f32 %v2006_v4, %v2005_v44  ;;  %v2069_v56 = vrot.slane %v2068_v50, 1 }
 0x2d4   :  { %v2049_v12 = vadd.f32 %v2048_v7, %v2047_v61  ;;  %v2028_v57 = vadd.f32 %v2027_v8, %v2026_v38 }
 0x2d5   :  { %v2081_v11 = vadd.f32 %v2080_v55, %v2007_v39  ;;  %v2070_v13 = vadd.f32 %v2069_v56, %v2068_v50 }
 0x2d6   :  { %v2083_v14 = vadd.f32 %v2080_v55, %v2049_v12  ;;  %v2082_v3 = vadd.f32 %v2080_v55, %v2028_v57 }
 0x2d7   :  { %v2085_v19 = vmul.f32 0.5, %v2081_v11  ;;  %v2084_v16 = vadd.f32 %v2080_v55, %v2070_v13 }
 0x2d8   :  { %v2087_v23 = vmul.f32 0.5, %v2083_v14  ;;  %v2086_v49 = vmul.f32 0.5, %v2082_v3 }
 0x2d9   :  { %v2088_v6 = vmul.f32 0.5, %v2084_v16  ;;  %2370 = vtanh.f32 %v2085_v19 }
 0x2da   :  { %2372 = vtanh.f32 %v2086_v49 }
 0x2db   :  { %2374 = vtanh.f32 %v2087_v23 }
 0x2dc   :  { %2376 = vtanh.f32 %v2088_v6 }
 0x2e3   :  { %v2371_v58 = vpop.eup %2370 }
 0x2e4   :  { %v2373_v9 = vpop.eup %2372  ;;  %v2093_v17 = vmul.f32 0.5, %v2371_v58 }
 0x2e5   :  { %v2375_v30 = vpop.eup %2374  ;;  %v2094_v18 = vmul.f32 0.5, %v2373_v9 }
 0x2e6   :  { %v2377_v33 = vpop.eup %2376  ;;  %v2095_v34 = vmul.f32 0.5, %v2375_v30  ;;  %v2097_v35 = vadd.f32 0.5, %v2093_v17 }
 0x2e7   :  { %v2096_v21 = vmul.f32 0.5, %v2377_v33  ;;  %v2098_v36 = vadd.f32 0.5, %v2094_v18 }
 0x2e8   :  { %v2099_v22 = vadd.f32 0.5, %v2095_v34 }
 0x2e9   :  { %v2100_v37 = vadd.f32 0.5, %v2096_v21  ;;  %v2105_v53 = vcombine.low %v2097_v35, %v2098_v36 }
 0x2eb   :  { %v2106_v63 = vcombine.low %v2099_v22, %v2100_v37  ;;  %v2113_v15 = vrot.slane %v2105_v53, %v2112_v10 }
 0x2ed   :  { %v2120_v24 = vrot.slane %v2106_v63, %v2112_v10 }
 0x2ef   :  { %v2121_v25 = vcombine.low %v2113_v15, %v2120_v24 }
 0x2f1   :  { %v2128_v40 = vrot.slane %v2121_v25, %v2112_v10 }
 0x2f3   :  { %2134 = vst.msk [vmem:[#allocation3] sm:$0xf] %vm2132_vm1, %v2128_v40 }
 0x2f4   :  { %2389 = shalt.err (!%p2386_p4)
}
 0x2f5   :  { %s2390_s21 = scalar_lea.hbm %s3195_s7, 64 }
 0x2f6   :  { %p2391_p5 = scmp.ne.s32.totalorder %s3195_s7, %s2390_s21  ;;  %p2394_p6 = scmp.lt.u32.totalorder %s2390_s21, %s3195_s7 }
 0x2f8   :  { %p2396_p7 = pnand %p2394_p6, %p2391_p5 }
 0x2fa   :  { %2399 = shalt.err (!%p2396_p7)
}
 0x2fb   :  { %2144 = dma.vmem_to_hbm [thread:$0]  %s2142_s17, 64, %s3195_s7, [#allocation4]  }
 0x2fc   :  { %2400 = dma.done.wait [#allocation4], 64  }
 0x2fd   :  { %2401 = vsyncadd [#allocation4], 4294967232 }
 0x2fe   :  { %2148 = vsyncpa [#allocation4], 1 }

</bundles_post_ra>
